<compile_context>
chip_gen: v6e
topology: v6e:2x2x1
jax: 0.10.0
libtpu: 0.0.40
codegen_flags: <defaults>
</compile_context>

<pallas_src>
import functools

import jax
import jax.numpy as jnp
from jax.experimental import pallas as pl
from jax.experimental.pallas import tpu as pltpu

BN_EPS = 1e-5


def _conv_prelu_kernel(x0_ref, x1_ref, x2_ref, w_ref, b_ref, alpha_ref, y_ref, st_ref):
    """One (n, d) output plane: Conv3d (+bias) + PReLU, plus per-step BN partial sums.

    x{k}_ref : (1, 1, H+2, (W+2)*Cin)    padded input plane at depth d+k
    w_ref    : (3, 3, (W+2)*Cin, W*Cout) banded weights  [kd, kh, (w', ci), (w, co)]
    b_ref    : (1, W*Cout)               conv bias tiled over w
    alpha_ref: (1, W*Cout)               PReLU alpha broadcast to all lanes
    y_ref    : (1, 1, H, W*Cout)         pre-BN activations (output)
    st_ref   : (1, 2, W*Cout)            per-step [sum_h y, sum_h y^2] (output)
    """
    h_out = y_ref.shape[2]
    wc = y_ref.shape[3]
    planes = (x0_ref, x1_ref, x2_ref)

    acc = jnp.zeros((h_out, wc), jnp.float32)
    for kd in range(3):
        for kh in range(3):
            patch = planes[kd][0, 0, kh:kh + h_out, :]          # (H, (W+2)*Cin) sublane slice
            acc = acc + jnp.dot(patch, w_ref[kd, kh],
                                preferred_element_type=jnp.float32)

    y = acc + b_ref[...]
    y = jnp.where(y >= 0, y, alpha_ref[...] * y)                # PReLU (single shared alpha)

    y_ref[0, 0] = y.astype(y_ref.dtype)
    s1 = jnp.sum(y, axis=0, keepdims=True)
    s2 = jnp.sum(y * y, axis=0, keepdims=True)
    st_ref[0] = jnp.concatenate([s1, s2], axis=0)


def _bn_kernel(y_ref, part_ref, fold_ref, gam_ref, bet_ref, out_ref, *, inv_count):
    """Apply training-mode BatchNorm3d to one (n, d) plane.

    part_ref : (N*D, 2, W*Cout)  partial sums from pass 1 (constant block index -> loaded once)
    fold_ref : (W*Cout, W*Cout)  fold[i, j] = (i % Cout == j % Cout): sums the W spatial copies
               of each channel and re-broadcasts the per-channel totals to every lane.
    """
    sums = jnp.sum(part_ref[...], axis=0)                                    # (2, WC)
    tot = jnp.dot(sums, fold_ref[...], preferred_element_type=jnp.float32)   # (2, WC)
    mean = tot[0:1, :] * inv_count
    var = tot[1:2, :] * inv_count - mean * mean                              # biased variance
    scale = jax.lax.rsqrt(var + BN_EPS) * gam_ref[...]
    shift = bet_ref[...] - mean * scale
    out_ref[0, 0] = (y_ref[0, 0] * scale + shift).astype(out_ref.dtype)


@jax.jit
def conv_component_3d(x, w, b, alpha, gamma, beta):
    """x: (N, Cin, D, H, W) NCDHW like PyTorch.  w: (Cout, Cin, 3, 3, 3)."""
    N, Cin, D, H, W = x.shape
    Cout = w.shape[0]
    WC = W * Cout
    WCI = (W + 2) * Cin
    M = N * D * H * W
    G = N * D

    # ---- glue: channels-last, zero-pad spatial dims, flatten (W+2, Cin) into the lane dim ----
    x_cl = jnp.transpose(x, (0, 2, 3, 4, 1)).astype(jnp.float32)     # (N, D, H, W, Cin)
    xp = jnp.pad(x_cl, ((0, 0), (1, 1), (1, 1), (1, 1), (0, 0)))     # (N, D+2, H+2, W+2, Cin)
    xp = xp.reshape(N, D + 2, H + 2, WCI)

    # ---- banded weight: B[kd, kh, (w+kw)*Cin+ci, w*Cout+co] = w[co, ci, kd, kh, kw] ----
    wt = jnp.transpose(w, (2, 3, 4, 1, 0)).astype(jnp.float32)       # (kd, kh, kw, ci, co)
    shift_eye = jnp.zeros((3, W + 2, W), jnp.float32)                # shift_eye[kw, w+kw, w] = 1
    for kw in range(3):
        shift_eye = shift_eye.at[kw, kw:kw + W, :].set(jnp.eye(W, dtype=jnp.float32))
    bweight = jnp.einsum("kpw,dhkio->dhpiwo", shift_eye, wt).reshape(3, 3, WCI, WC)

    b_t = jnp.tile(b.astype(jnp.float32), W).reshape(1, WC)
    alpha_t = jnp.full((1, WC), alpha, jnp.float32)
    gam_t = jnp.tile(gamma.astype(jnp.float32), W).reshape(1, WC)
    bet_t = jnp.tile(beta.astype(jnp.float32), W).reshape(1, WC)
    fold = jnp.tile(jnp.eye(Cout, dtype=jnp.float32), (W, W))        # (WC, WC)

    grid = (N, D)
    parallel = pltpu.CompilerParams(dimension_semantics=("parallel", "parallel"))

    # ---- pass 1: conv + bias + PReLU, plus per-step BN partial sums ----
    y_pre, partials = pl.pallas_call(
        _conv_prelu_kernel,
        grid=grid,
        in_specs=[
            pl.BlockSpec((1, 1, H + 2, WCI), lambda n, d: (n, d, 0, 0)),
            pl.BlockSpec((1, 1, H + 2, WCI), lambda n, d: (n, d + 1, 0, 0)),
            pl.BlockSpec((1, 1, H + 2, WCI), lambda n, d: (n, d + 2, 0, 0)),
            pl.BlockSpec((3, 3, WCI, WC), lambda n, d: (0, 0, 0, 0)),
            pl.BlockSpec((1, WC), lambda n, d: (0, 0)),
            pl.BlockSpec((1, WC), lambda n, d: (0, 0)),
        ],
        out_specs=[
            pl.BlockSpec((1, 1, H, WC), lambda n, d: (n, d, 0, 0)),
            pl.BlockSpec((1, 2, WC), lambda n, d: (n * D + d, 0, 0)),
        ],
        out_shape=[
            jax.ShapeDtypeStruct((N, D, H, WC), jnp.float32),
            jax.ShapeDtypeStruct((G, 2, WC), jnp.float32),
        ],
        compiler_params=parallel,
    )(xp, xp, xp, bweight, b_t, alpha_t)

    # ---- pass 2: BatchNorm3d with exact batch statistics ----
    out_flat = pl.pallas_call(
        functools.partial(_bn_kernel, inv_count=1.0 / M),
        grid=grid,
        in_specs=[
            pl.BlockSpec((1, 1, H, WC), lambda n, d: (n, d, 0, 0)),
            pl.BlockSpec((G, 2, WC), lambda n, d: (0, 0, 0)),
            pl.BlockSpec((WC, WC), lambda n, d: (0, 0)),
            pl.BlockSpec((1, WC), lambda n, d: (0, 0)),
            pl.BlockSpec((1, WC), lambda n, d: (0, 0)),
        ],
        out_specs=pl.BlockSpec((1, 1, H, WC), lambda n, d: (n, d, 0, 0)),
        out_shape=jax.ShapeDtypeStruct((N, D, H, WC), jnp.float32),
        compiler_params=parallel,
    )(y_pre, partials, fold, gam_t, bet_t)

    out = out_flat.reshape(N, D, H, W, Cout)
    return jnp.transpose(out, (0, 4, 1, 2, 3))                       # (N, Cout, D, H, W)


def _reference(x, w, b, alpha, gamma, beta):
    """Pure-JAX reference of the PyTorch forward (training-mode BatchNorm)."""
    y = jax.lax.conv_general_dilated(
        x, w, window_strides=(1, 1, 1), padding=((1, 1), (1, 1), (1, 1)),
        dimension_numbers=("NCDHW", "OIDHW", "NCDHW"))
    y = y + b.reshape(1, -1, 1, 1, 1)
    y = jnp.where(y >= 0, y, alpha * y)
    mean = jnp.mean(y, axis=(0, 2, 3, 4), keepdims=True)
    var = jnp.mean((y - mean) ** 2, axis=(0, 2, 3, 4), keepdims=True)
    y = (y - mean) / jnp.sqrt(var + BN_EPS)
    return y * gamma.reshape(1, -1, 1, 1, 1) + beta.reshape(1, -1, 1, 1, 1)


if __name__ == "__main__":
    # module config: in_channels=4, out_channels=8, k_size=3, stride=1, padding=1, bias=True
    N, Cin, Cout, D, H, W = 2, 4, 8, 8, 8, 8

    key = jax.random.PRNGKey(0)
    kx, kw, kb = jax.random.split(key, 3)

    x = jax.random.normal(kx, (N, Cin, D, H, W), dtype=jnp.float32)

    # deterministic parameter init (Conv3d-style uniform bound = 1/sqrt(fan_in))
    fan_in = Cin * 3 * 3 * 3
    bound = 1.0 / (fan_in ** 0.5)
    w = jax.random.uniform(kw, (Cout, Cin, 3, 3, 3), jnp.float32, -bound, bound)
    b = jax.random.uniform(kb, (Cout,), jnp.float32, -bound, bound)
    alpha = jnp.array(0.25, jnp.float32)      # PReLU(init=0.25), single shared parameter
    gamma = jnp.ones((Cout,), jnp.float32)    # BatchNorm3d affine init
    beta = jnp.zeros((Cout,), jnp.float32)
    # TODO(synk): BatchNorm running_mean/running_var buffer updates (training bookkeeping) are
    # not modeled; only the forward-pass normalization with batch statistics is implemented.

    out = conv_component_3d(x, w, b, alpha, gamma, beta)
    jax.block_until_ready(out)

    ref = _reference(x, w, b, alpha, gamma, beta)
    max_err = float(jnp.max(jnp.abs(out - ref)))
    assert out.shape == (N, Cout, D, H, W), out.shape
    assert max_err < 1e-3, f"mismatch vs reference: {max_err}"

    print("KERNEL_OK")
</pallas_src>

<mosaic_0001>
module attributes {stable_mosaic.version = 11 : i64} {
  func.func @_conv_prelu_kernel(%arg0: i32, %arg1: i32, %arg2: memref<1x1x10x40xf32, #tpu.memory_space<vmem>>, %arg3: memref<1x1x10x40xf32, #tpu.memory_space<vmem>>, %arg4: memref<1x1x10x40xf32, #tpu.memory_space<vmem>>, %arg5: memref<3x3x40x64xf32, #tpu.memory_space<vmem>>, %arg6: memref<1x64xf32, #tpu.memory_space<vmem>>, %arg7: memref<1x64xf32, #tpu.memory_space<vmem>>, %arg8: memref<1x1x8x64xf32, #tpu.memory_space<vmem>>, %arg9: memref<1x2x64xf32, #tpu.memory_space<vmem>>) attributes {dimension_semantics = [#tpu.dimension_semantics<parallel>, #tpu.dimension_semantics<parallel>], iteration_bounds = array<i64: 2, 8>, scalar_prefetch = 0 : i64, scratch_operands = 0 : i64, tpu.core_type = #tpu.core_type<tc>, window_params = [{transform_indices = @transform_0, window_bounds = array<i64: 1, 1, 10, 40>}, {transform_indices = @transform_1, window_bounds = array<i64: 1, 1, 10, 40>}, {transform_indices = @transform_2, window_bounds = array<i64: 1, 1, 10, 40>}, {pipeline_mode = #tpu.pipeline_mode<synchronous>, transform_indices = @transform_3, window_bounds = array<i64: 3, 3, 40, 64>}, {pipeline_mode = #tpu.pipeline_mode<synchronous>, transform_indices = @transform_4, window_bounds = array<i64: 1, 64>}, {pipeline_mode = #tpu.pipeline_mode<synchronous>, transform_indices = @transform_5, window_bounds = array<i64: 1, 64>}, {transform_indices = @transform_6, window_bounds = array<i64: 1, 1, 8, 64>}, {transform_indices = @transform_7, window_bounds = array<i64: 1, 2, 64>}]} {
    %cst = arith.constant 0.000000e+00 : f32
    %0 = vector.broadcast %cst : f32 to vector<8x64xf32>
    %c0 = arith.constant 0 : index
    %c0_0 = arith.constant 0 : index
    %c0_1 = arith.constant 0 : index
    %c0_2 = arith.constant 0 : index
    %1 = vector.load %arg2[%c0, %c0_0, %c0_1, %c0_2] : memref<1x1x10x40xf32, #tpu.memory_space<vmem>>, vector<1x1x8x40xf32>
    %2 = vector.shape_cast %1 : vector<1x1x8x40xf32> to vector<8x40xf32>
    %c0_3 = arith.constant 0 : index
    %c0_4 = arith.constant 0 : index
    %c0_5 = arith.constant 0 : index
    %c0_6 = arith.constant 0 : index
    %3 = vector.load %arg5[%c0_3, %c0_4, %c0_5, %c0_6] : memref<3x3x40x64xf32, #tpu.memory_space<vmem>>, vector<1x1x40x64xf32>
    %4 = vector.shape_cast %3 : vector<1x1x40x64xf32> to vector<40x64xf32>
    %cst_7 = arith.constant dense<0.000000e+00> : vector<8x64xf32>
    %5 = tpu.matmul %2, %4, %cst_7 {dimension_numbers = #tpu.dot_dimension_numbers<[1], [0], [0], [1], [0, 0, 1, 1], [], []>} : vector<8x40xf32>, vector<40x64xf32>, vector<8x64xf32> -> vector<8x64xf32>
    %6 = arith.addf %0, %5 : vector<8x64xf32>
    %c0_8 = arith.constant 0 : index
    %c0_9 = arith.constant 0 : index
    %c1 = arith.constant 1 : index
    %c0_10 = arith.constant 0 : index
    %7 = vector.load %arg2[%c0_8, %c0_9, %c1, %c0_10] : memref<1x1x10x40xf32, #tpu.memory_space<vmem>>, vector<1x1x8x40xf32>
    %8 = vector.shape_cast %7 : vector<1x1x8x40xf32> to vector<8x40xf32>
    %c0_11 = arith.constant 0 : index
    %c1_12 = arith.constant 1 : index
    %c0_13 = arith.constant 0 : index
    %c0_14 = arith.constant 0 : index
    %9 = vector.load %arg5[%c0_11, %c1_12, %c0_13, %c0_14] : memref<3x3x40x64xf32, #tpu.memory_space<vmem>>, vector<1x1x40x64xf32>
    %10 = vector.shape_cast %9 : vector<1x1x40x64xf32> to vector<40x64xf32>
    %cst_15 = arith.constant dense<0.000000e+00> : vector<8x64xf32>
    %11 = tpu.matmul %8, %10, %cst_15 {dimension_numbers = #tpu.dot_dimension_numbers<[1], [0], [0], [1], [0, 0, 1, 1], [], []>} : vector<8x40xf32>, vector<40x64xf32>, vector<8x64xf32> -> vector<8x64xf32>
    %12 = arith.addf %6, %11 : vector<8x64xf32>
    %c0_16 = arith.constant 0 : index
    %c0_17 = arith.constant 0 : index
    %c2 = arith.constant 2 : index
    %c0_18 = arith.constant 0 : index
    %13 = vector.load %arg2[%c0_16, %c0_17, %c2, %c0_18] : memref<1x1x10x40xf32, #tpu.memory_space<vmem>>, vector<1x1x8x40xf32>
    %14 = vector.shape_cast %13 : vector<1x1x8x40xf32> to vector<8x40xf32>
    %c0_19 = arith.constant 0 : index
    %c2_20 = arith.constant 2 : index
    %c0_21 = arith.constant 0 : index
    %c0_22 = arith.constant 0 : index
    %15 = vector.load %arg5[%c0_19, %c2_20, %c0_21, %c0_22] : memref<3x3x40x64xf32, #tpu.memory_space<vmem>>, vector<1x1x40x64xf32>
    %16 = vector.shape_cast %15 : vector<1x1x40x64xf32> to vector<40x64xf32>
    %cst_23 = arith.constant dense<0.000000e+00> : vector<8x64xf32>
    %17 = tpu.matmul %14, %16, %cst_23 {dimension_numbers = #tpu.dot_dimension_numbers<[1], [0], [0], [1], [0, 0, 1, 1], [], []>} : vector<8x40xf32>, vector<40x64xf32>, vector<8x64xf32> -> vector<8x64xf32>
    %18 = arith.addf %12, %17 : vector<8x64xf32>
    %c0_24 = arith.constant 0 : index
    %c0_25 = arith.constant 0 : index
    %c0_26 = arith.constant 0 : index
    %c0_27 = arith.constant 0 : index
    %19 = vector.load %arg3[%c0_24, %c0_25, %c0_26, %c0_27] : memref<1x1x10x40xf32, #tpu.memory_space<vmem>>, vector<1x1x8x40xf32>
    %20 = vector.shape_cast %19 : vector<1x1x8x40xf32> to vector<8x40xf32>
    %c1_28 = arith.constant 1 : index
    %c0_29 = arith.constant 0 : index
    %c0_30 = arith.constant 0 : index
    %c0_31 = arith.constant 0 : index
    %21 = vector.load %arg5[%c1_28, %c0_29, %c0_30, %c0_31] : memref<3x3x40x64xf32, #tpu.memory_space<vmem>>, vector<1x1x40x64xf32>
    %22 = vector.shape_cast %21 : vector<1x1x40x64xf32> to vector<40x64xf32>
    %cst_32 = arith.constant dense<0.000000e+00> : vector<8x64xf32>
    %23 = tpu.matmul %20, %22, %cst_32 {dimension_numbers = #tpu.dot_dimension_numbers<[1], [0], [0], [1], [0, 0, 1, 1], [], []>} : vector<8x40xf32>, vector<40x64xf32>, vector<8x64xf32> -> vector<8x64xf32>
    %24 = arith.addf %18, %23 : vector<8x64xf32>
    %c0_33 = arith.constant 0 : index
    %c0_34 = arith.constant 0 : index
    %c1_35 = arith.constant 1 : index
    %c0_36 = arith.constant 0 : index
    %25 = vector.load %arg3[%c0_33, %c0_34, %c1_35, %c0_36] : memref<1x1x10x40xf32, #tpu.memory_space<vmem>>, vector<1x1x8x40xf32>
    %26 = vector.shape_cast %25 : vector<1x1x8x40xf32> to vector<8x40xf32>
    %c1_37 = arith.constant 1 : index
    %c1_38 = arith.constant 1 : index
    %c0_39 = arith.constant 0 : index
    %c0_40 = arith.constant 0 : index
    %27 = vector.load %arg5[%c1_37, %c1_38, %c0_39, %c0_40] : memref<3x3x40x64xf32, #tpu.memory_space<vmem>>, vector<1x1x40x64xf32>
    %28 = vector.shape_cast %27 : vector<1x1x40x64xf32> to vector<40x64xf32>
    %cst_41 = arith.constant dense<0.000000e+00> : vector<8x64xf32>
    %29 = tpu.matmul %26, %28, %cst_41 {dimension_numbers = #tpu.dot_dimension_numbers<[1], [0], [0], [1], [0, 0, 1, 1], [], []>} : vector<8x40xf32>, vector<40x64xf32>, vector<8x64xf32> -> vector<8x64xf32>
    %30 = arith.addf %24, %29 : vector<8x64xf32>
    %c0_42 = arith.constant 0 : index
    %c0_43 = arith.constant 0 : index
    %c2_44 = arith.constant 2 : index
    %c0_45 = arith.constant 0 : index
    %31 = vector.load %arg3[%c0_42, %c0_43, %c2_44, %c0_45] : memref<1x1x10x40xf32, #tpu.memory_space<vmem>>, vector<1x1x8x40xf32>
    %32 = vector.shape_cast %31 : vector<1x1x8x40xf32> to vector<8x40xf32>
    %c1_46 = arith.constant 1 : index
    %c2_47 = arith.constant 2 : index
    %c0_48 = arith.constant 0 : index
    %c0_49 = arith.constant 0 : index
    %33 = vector.load %arg5[%c1_46, %c2_47, %c0_48, %c0_49] : memref<3x3x40x64xf32, #tpu.memory_space<vmem>>, vector<1x1x40x64xf32>
    %34 = vector.shape_cast %33 : vector<1x1x40x64xf32> to vector<40x64xf32>
    %cst_50 = arith.constant dense<0.000000e+00> : vector<8x64xf32>
    %35 = tpu.matmul %32, %34, %cst_50 {dimension_numbers = #tpu.dot_dimension_numbers<[1], [0], [0], [1], [0, 0, 1, 1], [], []>} : vector<8x40xf32>, vector<40x64xf32>, vector<8x64xf32> -> vector<8x64xf32>
    %36 = arith.addf %30, %35 : vector<8x64xf32>
    %c0_51 = arith.constant 0 : index
    %c0_52 = arith.constant 0 : index
    %c0_53 = arith.constant 0 : index
    %c0_54 = arith.constant 0 : index
    %37 = vector.load %arg4[%c0_51, %c0_52, %c0_53, %c0_54] : memref<1x1x10x40xf32, #tpu.memory_space<vmem>>, vector<1x1x8x40xf32>
    %38 = vector.shape_cast %37 : vector<1x1x8x40xf32> to vector<8x40xf32>
    %c2_55 = arith.constant 2 : index
    %c0_56 = arith.constant 0 : index
    %c0_57 = arith.constant 0 : index
    %c0_58 = arith.constant 0 : index
    %39 = vector.load %arg5[%c2_55, %c0_56, %c0_57, %c0_58] : memref<3x3x40x64xf32, #tpu.memory_space<vmem>>, vector<1x1x40x64xf32>
    %40 = vector.shape_cast %39 : vector<1x1x40x64xf32> to vector<40x64xf32>
    %cst_59 = arith.constant dense<0.000000e+00> : vector<8x64xf32>
    %41 = tpu.matmul %38, %40, %cst_59 {dimension_numbers = #tpu.dot_dimension_numbers<[1], [0], [0], [1], [0, 0, 1, 1], [], []>} : vector<8x40xf32>, vector<40x64xf32>, vector<8x64xf32> -> vector<8x64xf32>
    %42 = arith.addf %36, %41 : vector<8x64xf32>
    %c0_60 = arith.constant 0 : index
    %c0_61 = arith.constant 0 : index
    %c1_62 = arith.constant 1 : index
    %c0_63 = arith.constant 0 : index
    %43 = vector.load %arg4[%c0_60, %c0_61, %c1_62, %c0_63] : memref<1x1x10x40xf32, #tpu.memory_space<vmem>>, vector<1x1x8x40xf32>
    %44 = vector.shape_cast %43 : vector<1x1x8x40xf32> to vector<8x40xf32>
    %c2_64 = arith.constant 2 : index
    %c1_65 = arith.constant 1 : index
    %c0_66 = arith.constant 0 : index
    %c0_67 = arith.constant 0 : index
    %45 = vector.load %arg5[%c2_64, %c1_65, %c0_66, %c0_67] : memref<3x3x40x64xf32, #tpu.memory_space<vmem>>, vector<1x1x40x64xf32>
    %46 = vector.shape_cast %45 : vector<1x1x40x64xf32> to vector<40x64xf32>
    %cst_68 = arith.constant dense<0.000000e+00> : vector<8x64xf32>
    %47 = tpu.matmul %44, %46, %cst_68 {dimension_numbers = #tpu.dot_dimension_numbers<[1], [0], [0], [1], [0, 0, 1, 1], [], []>} : vector<8x40xf32>, vector<40x64xf32>, vector<8x64xf32> -> vector<8x64xf32>
    %48 = arith.addf %42, %47 : vector<8x64xf32>
    %c0_69 = arith.constant 0 : index
    %c0_70 = arith.constant 0 : index
    %c2_71 = arith.constant 2 : index
    %c0_72 = arith.constant 0 : index
    %49 = vector.load %arg4[%c0_69, %c0_70, %c2_71, %c0_72] : memref<1x1x10x40xf32, #tpu.memory_space<vmem>>, vector<1x1x8x40xf32>
    %50 = vector.shape_cast %49 : vector<1x1x8x40xf32> to vector<8x40xf32>
    %c2_73 = arith.constant 2 : index
    %c2_74 = arith.constant 2 : index
    %c0_75 = arith.constant 0 : index
    %c0_76 = arith.constant 0 : index
    %51 = vector.load %arg5[%c2_73, %c2_74, %c0_75, %c0_76] : memref<3x3x40x64xf32, #tpu.memory_space<vmem>>, vector<1x1x40x64xf32>
    %52 = vector.shape_cast %51 : vector<1x1x40x64xf32> to vector<40x64xf32>
    %cst_77 = arith.constant dense<0.000000e+00> : vector<8x64xf32>
    %53 = tpu.matmul %50, %52, %cst_77 {dimension_numbers = #tpu.dot_dimension_numbers<[1], [0], [0], [1], [0, 0, 1, 1], [], []>} : vector<8x40xf32>, vector<40x64xf32>, vector<8x64xf32> -> vector<8x64xf32>
    %54 = arith.addf %48, %53 : vector<8x64xf32>
    %c0_78 = arith.constant 0 : index
    %c0_79 = arith.constant 0 : index
    %55 = vector.load %arg6[%c0_78, %c0_79] : memref<1x64xf32, #tpu.memory_space<vmem>>, vector<1x64xf32>
    %56 = vector.broadcast %55 : vector<1x64xf32> to vector<8x64xf32>
    %57 = arith.addf %54, %56 : vector<8x64xf32>
    %cst_80 = arith.constant 0.000000e+00 : f32
    %58 = vector.broadcast %cst_80 : f32 to vector<8x64xf32>
    %59 = arith.cmpf oge, %57, %58 : vector<8x64xf32>
    %c0_81 = arith.constant 0 : index
    %c0_82 = arith.constant 0 : index
    %60 = vector.load %arg7[%c0_81, %c0_82] : memref<1x64xf32, #tpu.memory_space<vmem>>, vector<1x64xf32>
    %61 = vector.broadcast %60 : vector<1x64xf32> to vector<8x64xf32>
    %62 = arith.mulf %61, %57 : vector<8x64xf32>
    %63 = arith.select %59, %57, %62 : vector<8x64xi1>, vector<8x64xf32>
    %c0_83 = arith.constant 0 : index
    %c0_84 = arith.constant 0 : index
    %c0_85 = arith.constant 0 : index
    %c0_86 = arith.constant 0 : index
    %64 = vector.load %arg8[%c0_83, %c0_84, %c0_85, %c0_86] : memref<1x1x8x64xf32, #tpu.memory_space<vmem>>, vector<1x1x8x64xf32>
    %65 = vector.shape_cast %64 : vector<1x1x8x64xf32> to vector<8x64xf32>
    %66 = vector.shape_cast %63 : vector<8x64xf32> to vector<1x1x8x64xf32>
    tpu.vector_store %arg8[%c0_83, %c0_84, %c0_85, %c0_86], %66 {strides = array<i32>} : memref<1x1x8x64xf32, #tpu.memory_space<vmem>>, vector<1x1x8x64xf32>,
    %cst_87 = arith.constant dense<0.000000e+00> : vector<64xf32>
    %67 = vector.multi_reduction <add>, %63, %cst_87 [0] : vector<8x64xf32> to vector<64xf32>
    %68 = vector.shape_cast %67 : vector<64xf32> to vector<1x64xf32>
    %69 = arith.mulf %63, %63 : vector<8x64xf32>
    %cst_88 = arith.constant dense<0.000000e+00> : vector<64xf32>
    %70 = vector.multi_reduction <add>, %69, %cst_88 [0] : vector<8x64xf32> to vector<64xf32>
    %71 = vector.shape_cast %70 : vector<64xf32> to vector<1x64xf32>
    %72 = tpu.concatenate %68, %71 in 0 : vector<1x64xf32>, vector<1x64xf32> -> vector<2x64xf32>
    %c0_89 = arith.constant 0 : index
    %c0_90 = arith.constant 0 : index
    %c0_91 = arith.constant 0 : index
    %73 = vector.load %arg9[%c0_89, %c0_90, %c0_91] : memref<1x2x64xf32, #tpu.memory_space<vmem>>, vector<1x2x64xf32>
    %74 = vector.shape_cast %73 : vector<1x2x64xf32> to vector<2x64xf32>
    %75 = vector.shape_cast %72 : vector<2x64xf32> to vector<1x2x64xf32>
    tpu.vector_store %arg9[%c0_89, %c0_90, %c0_91], %75 {strides = array<i32>} : memref<1x2x64xf32, #tpu.memory_space<vmem>>, vector<1x2x64xf32>,
    return
  }
  func.func @transform_0(%arg0: i32, %arg1: i32) -> (i32, i32, i32, i32) {
    %c0_i32 = arith.constant 0 : i32
    %c0_i32_0 = arith.constant 0 : i32
    %c0_i32_1 = arith.constant 0 : i32
    return %arg0, %arg1, %c0_i32, %c0_i32_0 : i32, i32, i32, i32
  }
  func.func @transform_1(%arg0: i32, %arg1: i32) -> (i32, i32, i32, i32) {
    %c1_i32 = arith.constant 1 : i32
    %0 = arith.addi %arg1, %c1_i32 : i32
    %c0_i32 = arith.constant 0 : i32
    %c0_i32_0 = arith.constant 0 : i32
    %c0_i32_1 = arith.constant 0 : i32
    return %arg0, %0, %c0_i32, %c0_i32_0 : i32, i32, i32, i32
  }
  func.func @transform_2(%arg0: i32, %arg1: i32) -> (i32, i32, i32, i32) {
    %c2_i32 = arith.constant 2 : i32
    %0 = arith.addi %arg1, %c2_i32 : i32
    %c0_i32 = arith.constant 0 : i32
    %c0_i32_0 = arith.constant 0 : i32
    %c0_i32_1 = arith.constant 0 : i32
    return %arg0, %0, %c0_i32, %c0_i32_0 : i32, i32, i32, i32
  }
  func.func @transform_3(%arg0: i32, %arg1: i32) -> (i32, i32, i32, i32) {
    %c0_i32 = arith.constant 0 : i32
    %c0_i32_0 = arith.constant 0 : i32
    %c0_i32_1 = arith.constant 0 : i32
    %c0_i32_2 = arith.constant 0 : i32
    %c0_i32_3 = arith.constant 0 : i32
    return %c0_i32, %c0_i32_0, %c0_i32_1, %c0_i32_2 : i32, i32, i32, i32
  }
  func.func @transform_4(%arg0: i32, %arg1: i32) -> (i32, i32) {
    %c0_i32 = arith.constant 0 : i32
    %c0_i32_0 = arith.constant 0 : i32
    %c0_i32_1 = arith.constant 0 : i32
    return %c0_i32, %c0_i32_0 : i32, i32
  }
  func.func @transform_5(%arg0: i32, %arg1: i32) -> (i32, i32) {
    %c0_i32 = arith.constant 0 : i32
    %c0_i32_0 = arith.constant 0 : i32
    %c0_i32_1 = arith.constant 0 : i32
    return %c0_i32, %c0_i32_0 : i32, i32
  }
  func.func @transform_6(%arg0: i32, %arg1: i32) -> (i32, i32, i32, i32) {
    %c0_i32 = arith.constant 0 : i32
    %c0_i32_0 = arith.constant 0 : i32
    %c0_i32_1 = arith.constant 0 : i32
    return %arg0, %arg1, %c0_i32, %c0_i32_0 : i32, i32, i32, i32
  }
  func.func @transform_7(%arg0: i32, %arg1: i32) -> (i32, i32, i32) {
    %c8_i32 = arith.constant 8 : i32
    %0 = arith.muli %arg0, %c8_i32 : i32
    %1 = arith.addi %0, %arg1 : i32
    %c0_i32 = arith.constant 0 : i32
    %c0_i32_0 = arith.constant 0 : i32
    %c0_i32_1 = arith.constant 0 : i32
    return %1, %c0_i32, %c0_i32_0 : i32, i32, i32
  }
}

module attributes {stable_mosaic.version = 11 : i64} {
  func.func @_bn_kernel(%arg0: i32, %arg1: i32, %arg2: memref<1x1x8x64xf32, #tpu.memory_space<vmem>>, %arg3: memref<16x2x64xf32, #tpu.memory_space<vmem>>, %arg4: memref<64x64xf32, #tpu.memory_space<vmem>>, %arg5: memref<1x64xf32, #tpu.memory_space<vmem>>, %arg6: memref<1x64xf32, #tpu.memory_space<vmem>>, %arg7: memref<1x1x8x64xf32, #tpu.memory_space<vmem>>) attributes {dimension_semantics = [#tpu.dimension_semantics<parallel>, #tpu.dimension_semantics<parallel>], iteration_bounds = array<i64: 2, 8>, scalar_prefetch = 0 : i64, scratch_operands = 0 : i64, tpu.core_type = #tpu.core_type<tc>, window_params = [{transform_indices = @transform_0, window_bounds = array<i64: 1, 1, 8, 64>}, {pipeline_mode = #tpu.pipeline_mode<synchronous>, transform_indices = @transform_1, window_bounds = array<i64: 16, 2, 64>}, {pipeline_mode = #tpu.pipeline_mode<synchronous>, transform_indices = @transform_2, window_bounds = array<i64: 64, 64>}, {pipeline_mode = #tpu.pipeline_mode<synchronous>, transform_indices = @transform_3, window_bounds = array<i64: 1, 64>}, {pipeline_mode = #tpu.pipeline_mode<synchronous>, transform_indices = @transform_4, window_bounds = array<i64: 1, 64>}, {transform_indices = @transform_5, window_bounds = array<i64: 1, 1, 8, 64>}]} {
    %c0 = arith.constant 0 : index
    %c0_0 = arith.constant 0 : index
    %c0_1 = arith.constant 0 : index
    %0 = vector.load %arg3[%c0, %c0_0, %c0_1] : memref<16x2x64xf32, #tpu.memory_space<vmem>>, vector<16x2x64xf32>
    %cst = arith.constant dense<0.000000e+00> : vector<2x64xf32>
    %1 = vector.multi_reduction <add>, %0, %cst [0] : vector<16x2x64xf32> to vector<2x64xf32>
    %c0_2 = arith.constant 0 : index
    %c0_3 = arith.constant 0 : index
    %2 = vector.load %arg4[%c0_2, %c0_3] : memref<64x64xf32, #tpu.memory_space<vmem>>, vector<64x64xf32>
    %cst_4 = arith.constant dense<0.000000e+00> : vector<2x64xf32>
    %3 = tpu.matmul %1, %2, %cst_4 {dimension_numbers = #tpu.dot_dimension_numbers<[1], [0], [0], [1], [0, 0, 1, 1], [], []>} : vector<2x64xf32>, vector<64x64xf32>, vector<2x64xf32> -> vector<2x64xf32>
    %4 = vector.extract_strided_slice %3 {offsets = [0, 0], sizes = [1, 64], strides = [1, 1]} : vector<2x64xf32> to vector<1x64xf32>
    %cst_5 = arith.constant 9.765625E-4 : f32
    %5 = vector.broadcast %cst_5 : f32 to vector<1x64xf32>
    %6 = arith.mulf %4, %5 : vector<1x64xf32>
    %7 = vector.extract_strided_slice %3 {offsets = [1, 0], sizes = [1, 64], strides = [1, 1]} : vector<2x64xf32> to vector<1x64xf32>
    %cst_6 = arith.constant 9.765625E-4 : f32
    %8 = vector.broadcast %cst_6 : f32 to vector<1x64xf32>
    %9 = arith.mulf %7, %8 : vector<1x64xf32>
    %10 = arith.mulf %6, %6 : vector<1x64xf32>
    %11 = arith.subf %9, %10 : vector<1x64xf32>
    %cst_7 = arith.constant 9.99999974E-6 : f32
    %12 = vector.broadcast %cst_7 : f32 to vector<1x64xf32>
    %13 = arith.addf %11, %12 : vector<1x64xf32>
    %14 = math.rsqrt %13 : vector<1x64xf32>
    %c0_8 = arith.constant 0 : index
    %c0_9 = arith.constant 0 : index
    %15 = vector.load %arg5[%c0_8, %c0_9] : memref<1x64xf32, #tpu.memory_space<vmem>>, vector<1x64xf32>
    %16 = arith.mulf %14, %15 : vector<1x64xf32>
    %c0_10 = arith.constant 0 : index
    %c0_11 = arith.constant 0 : index
    %17 = vector.load %arg6[%c0_10, %c0_11] : memref<1x64xf32, #tpu.memory_space<vmem>>, vector<1x64xf32>
    %18 = arith.mulf %6, %16 : vector<1x64xf32>
    %19 = arith.subf %17, %18 : vector<1x64xf32>
    %c0_12 = arith.constant 0 : index
    %c0_13 = arith.constant 0 : index
    %c0_14 = arith.constant 0 : index
    %c0_15 = arith.constant 0 : index
    %20 = vector.load %arg2[%c0_12, %c0_13, %c0_14, %c0_15] : memref<1x1x8x64xf32, #tpu.memory_space<vmem>>, vector<1x1x8x64xf32>
    %21 = vector.shape_cast %20 : vector<1x1x8x64xf32> to vector<8x64xf32>
    %22 = vector.broadcast %16 : vector<1x64xf32> to vector<8x64xf32>
    %23 = arith.mulf %21, %22 : vector<8x64xf32>
    %24 = vector.broadcast %19 : vector<1x64xf32> to vector<8x64xf32>
    %25 = arith.addf %23, %24 : vector<8x64xf32>
    %c0_16 = arith.constant 0 : index
    %c0_17 = arith.constant 0 : index
    %c0_18 = arith.constant 0 : index
    %c0_19 = arith.constant 0 : index
    %26 = vector.load %arg7[%c0_16, %c0_17, %c0_18, %c0_19] : memref<1x1x8x64xf32, #tpu.memory_space<vmem>>, vector<1x1x8x64xf32>
    %27 = vector.shape_cast %26 : vector<1x1x8x64xf32> to vector<8x64xf32>
    %28 = vector.shape_cast %25 : vector<8x64xf32> to vector<1x1x8x64xf32>
    tpu.vector_store %arg7[%c0_16, %c0_17, %c0_18, %c0_19], %28 {strides = array<i32>} : memref<1x1x8x64xf32, #tpu.memory_space<vmem>>, vector<1x1x8x64xf32>,
    return
  }
  func.func @transform_0(%arg0: i32, %arg1: i32) -> (i32, i32, i32, i32) {
    %c0_i32 = arith.constant 0 : i32
    %c0_i32_0 = arith.constant 0 : i32
    %c0_i32_1 = arith.constant 0 : i32
    return %arg0, %arg1, %c0_i32, %c0_i32_0 : i32, i32, i32, i32
  }
  func.func @transform_1(%arg0: i32, %arg1: i32) -> (i32, i32, i32) {
    %c0_i32 = arith.constant 0 : i32
    %c0_i32_0 = arith.constant 0 : i32
    %c0_i32_1 = arith.constant 0 : i32
    %c0_i32_2 = arith.constant 0 : i32
    return %c0_i32, %c0_i32_0, %c0_i32_1 : i32, i32, i32
  }
  func.func @transform_2(%arg0: i32, %arg1: i32) -> (i32, i32) {
    %c0_i32 = arith.constant 0 : i32
    %c0_i32_0 = arith.constant 0 : i32
    %c0_i32_1 = arith.constant 0 : i32
    return %c0_i32, %c0_i32_0 : i32, i32
  }
  func.func @transform_3(%arg0: i32, %arg1: i32) -> (i32, i32) {
    %c0_i32 = arith.constant 0 : i32
    %c0_i32_0 = arith.constant 0 : i32
    %c0_i32_1 = arith.constant 0 : i32
    return %c0_i32, %c0_i32_0 : i32, i32
  }
  func.func @transform_4(%arg0: i32, %arg1: i32) -> (i32, i32) {
    %c0_i32 = arith.constant 0 : i32
    %c0_i32_0 = arith.constant 0 : i32
    %c0_i32_1 = arith.constant 0 : i32
    return %c0_i32, %c0_i32_0 : i32, i32
  }
  func.func @transform_5(%arg0: i32, %arg1: i32) -> (i32, i32, i32, i32) {
    %c0_i32 = arith.constant 0 : i32
    %c0_i32_0 = arith.constant 0 : i32
    %c0_i32_1 = arith.constant 0 : i32
    return %arg0, %arg1, %c0_i32, %c0_i32_0 : i32, i32, i32, i32
  }
}

</mosaic_0001>

<bundles_post_ra>
// kernel: tile.23
= control target key start
LH: loop header
LB: loop body
LE: loop exit
PB: predicated region body
PF: predicated region fallthrough
CT: control target
= control target key end

     0   :  { %s22_s0 = inlined_call_operand.vmem [shape: f32[8], index: 0, kind: input, shape index: {}]   ;;  %s23_s1 = inlined_call_operand.vmem [shape: f32[8,8], index: 1, kind: output, shape index: {}]  }
   0x1   :  { %v4_v0 = vld [vmem:[%s22_s0] ss:$0 sm:$0xff] }
   0x2   :  { %5 = vst [vmem:[%s23_s1] sm:$0xff] %v4_v0 }

// kernel: tile.24
= control target key start
LH: loop header
LB: loop body
LE: loop exit
PB: predicated region body
PF: predicated region fallthrough
CT: control target
= control target key end

     0   :  { %s69_s10 = smov 56   ;;  %s70_s11 = smov 40   ;;  %vm3_vm0 = vcmask 64512   ;;  %vm9_vm1 = vcmask 523712   ;;  %vm15_vm2 = vcmask 458112   ;;  %vm21_vm3 = vcmask 392512   ;;  %s113_s0 = inlined_call_operand.vmem [shape: f32[8,8], index: 0, kind: input, shape index: {}]   ;;  %s114_s1 = inlined_call_operand.vmem [shape: f32[1,64], index: 1, kind: output, shape index: {}]  }
   0x1   :  { %v55_v0 = vld [vmem:[%s113_s0 + $0x7] sm:$0x1]   ;;  %v57_v1 = vld [vmem:[%s113_s0 + $0x5] sm:$0x1]   ;;  %v56_v2 = vld [vmem:[%s113_s0 + $0x6] sm:$0x1]  }
   0x2   :  { %7 = vrot.lane.b32.xlu0 %v55_v0, %s69_s10  ;;  %19 = vrot.lane.b32.xlu1 %v57_v1, %s70_s11  ;;  %v58_v3 = vld [vmem:[%s113_s0 + $0x4] sm:$0x1]   ;;  %v2_v4 = vld [vmem:[%s113_s0] sm:$0x1]   ;;  %s71_s18 = smov 48   ;;  %s72_s19 = smov 32  }
   0x3   :  { %4 = vst.msk [vmem:[#allocation0] sm:$0x1] %vm3_vm0, %v2_v4   ;;  %v59_v5 = vld [vmem:[%s113_s0 + $0x3] sm:$0x1]   ;;  %v60_v6 = vld [vmem:[%s113_s0 + $0x2] sm:$0x1]  }
   0x4   :  { %s73_s24 = smov 24   ;;  %s74_s25 = smov 16   ;;  %v61_v7 = vld [vmem:[%s113_s0 + $0x1] sm:$0x1]   ;;  %vm27_vm4 = vcmask 326912   ;;  %vm33_vm5 = vcmask 261312  }
   0x5   :  { %s75_s0 = smov 8   ;;  %vm39_vm6 = vcmask 195712   ;;  %vm45_vm7 = vcmask 130112  }
   0x6   :  { %13 = vrot.lane.b32.xlu0 %v56_v2, %s71_s18  ;;  %25 = vrot.lane.b32.xlu1 %v58_v3, %s72_s19 }
   0xa   :  { %31 = vrot.lane.b32.xlu0 %v59_v5, %s73_s24  ;;  %37 = vrot.lane.b32.xlu1 %v60_v6, %s74_s25 }
   0xe   :  { %43 = vrot.lane.b32.xlu0 %v61_v7, %s75_s0 }
  0x74   :  { %v8_v8 = vpop.permute.xlu0 %7   ;;  %v20_v9 = vpop.permute.xlu1 %19  }
  0x75   :  { %10 = vst.msk [vmem:[#allocation0] sm:$0x1] %vm9_vm1, %v8_v8  }
  0x78   :  { %v14_v10 = vpop.permute.xlu0 %13   ;;  %v26_v11 = vpop.permute.xlu1 %25  }
  0x79   :  { %16 = vst.msk [vmem:[#allocation0] sm:$0x1] %vm15_vm2, %v14_v10  }
  0x7a   :  { %22 = vst.msk [vmem:[#allocation0] sm:$0x1] %vm21_vm3, %v20_v9  }
  0x7b   :  { %28 = vst.msk [vmem:[#allocation0] sm:$0x1] %vm27_vm4, %v26_v11  }
  0x7c   :  { %v32_v12 = vpop.permute.xlu0 %31   ;;  %v38_v13 = vpop.permute.xlu1 %37  }
  0x7d   :  { %34 = vst.msk [vmem:[#allocation0] sm:$0x1] %vm33_vm5, %v32_v12  }
  0x7e   :  { %40 = vst.msk [vmem:[#allocation0] sm:$0x1] %vm39_vm6, %v38_v13  }
  0x80   :  { %v44_v14 = vpop.permute.xlu0 %43  }
  0x81   :  { %46 = vst.msk [vmem:[#allocation0] sm:$0x1] %vm45_vm7, %v44_v14  }
  0x88   :  { %v51_v15 = vld [vmem:[#allocation0] sm:$0x1] }
  0x89   :  { %54 = vst [vmem:[%s114_s1] sm:$0x1] %v51_v15 }

// kernel: tile.38
= control target key start
LH: loop header
LB: loop body
LE: loop exit
PB: predicated region body
PF: predicated region fallthrough
CT: control target
= control target key end

     0   :  { %s442_s0 = inlined_call_operand.vmem [shape: f32[8,8], index: 0, kind: input, shape index: {}]   ;;  %s443_s1 = inlined_call_operand.vmem [shape: f32[8,8,8,8], index: 1, kind: output, shape index: {}]  }
   0x1   :  { %v4_v0 = vld [vmem:[%s442_s0] ss:$0 sm:$0xff]  ;;  %v153_v1 = vld [vmem:[%s442_s0 + $0x1] ss:$0 sm:$0xff]  ;;  %v162_v2 = vld [vmem:[%s442_s0 + $0x2] ss:$0 sm:$0xff] }
   0x2   :  { %5 = vst [vmem:[%s443_s1] sm:$0xff] %v4_v0  ;;  %146 = vst [vmem:[%s443_s1 + $0x40] sm:$0xff] %v4_v0  ;;  %v171_v3 = vld [vmem:[%s442_s0 + $0x3] ss:$0 sm:$0xff]  ;;  %v180_v4 = vld [vmem:[%s442_s0 + $0x4] ss:$0 sm:$0xff] }
   0x3   :  { %147 = vst [vmem:[%s443_s1 + $0x80] sm:$0xff] %v4_v0  ;;  %148 = vst [vmem:[%s443_s1 + $0xc0] sm:$0xff] %v4_v0  ;;  %v189_v5 = vld [vmem:[%s442_s0 + $0x5] ss:$0 sm:$0xff]  ;;  %v198_v6 = vld [vmem:[%s442_s0 + $0x6] ss:$0 sm:$0xff] }
   0x4   :  { %149 = vst [vmem:[%s443_s1 + $0x100] sm:$0xff] %v4_v0  ;;  %150 = vst [vmem:[%s443_s1 + $0x140] sm:$0xff] %v4_v0  ;;  %v207_v7 = vld [vmem:[%s442_s0 + $0x7] ss:$0 sm:$0xff] }
   0x5   :  { %151 = vst [vmem:[%s443_s1 + $0x180] sm:$0xff] %v4_v0  ;;  %152 = vst [vmem:[%s443_s1 + $0x1c0] sm:$0xff] %v4_v0 }
   0x6   :  { %154 = vst [vmem:[%s443_s1 + $0x8] sm:$0xff] %v153_v1  ;;  %155 = vst [vmem:[%s443_s1 + $0x48] sm:$0xff] %v153_v1 }
   0x7   :  { %156 = vst [vmem:[%s443_s1 + $0x88] sm:$0xff] %v153_v1  ;;  %157 = vst [vmem:[%s443_s1 + $0xc8] sm:$0xff] %v153_v1 }
   0x8   :  { %158 = vst [vmem:[%s443_s1 + $0x108] sm:$0xff] %v153_v1  ;;  %159 = vst [vmem:[%s443_s1 + $0x148] sm:$0xff] %v153_v1 }
   0x9   :  { %160 = vst [vmem:[%s443_s1 + $0x188] sm:$0xff] %v153_v1  ;;  %161 = vst [vmem:[%s443_s1 + $0x1c8] sm:$0xff] %v153_v1 }
   0xa   :  { %163 = vst [vmem:[%s443_s1 + $0x10] sm:$0xff] %v162_v2  ;;  %164 = vst [vmem:[%s443_s1 + $0x50] sm:$0xff] %v162_v2 }
   0xb   :  { %165 = vst [vmem:[%s443_s1 + $0x90] sm:$0xff] %v162_v2  ;;  %166 = vst [vmem:[%s443_s1 + $0xd0] sm:$0xff] %v162_v2 }
   0xc   :  { %167 = vst [vmem:[%s443_s1 + $0x110] sm:$0xff] %v162_v2  ;;  %168 = vst [vmem:[%s443_s1 + $0x150] sm:$0xff] %v162_v2 }
   0xd   :  { %169 = vst [vmem:[%s443_s1 + $0x190] sm:$0xff] %v162_v2  ;;  %170 = vst [vmem:[%s443_s1 + $0x1d0] sm:$0xff] %v162_v2 }
   0xe   :  { %172 = vst [vmem:[%s443_s1 + $0x18] sm:$0xff] %v171_v3  ;;  %173 = vst [vmem:[%s443_s1 + $0x58] sm:$0xff] %v171_v3 }
   0xf   :  { %174 = vst [vmem:[%s443_s1 + $0x98] sm:$0xff] %v171_v3  ;;  %175 = vst [vmem:[%s443_s1 + $0xd8] sm:$0xff] %v171_v3 }
  0x10   :  { %176 = vst [vmem:[%s443_s1 + $0x118] sm:$0xff] %v171_v3  ;;  %177 = vst [vmem:[%s443_s1 + $0x158] sm:$0xff] %v171_v3 }
  0x11   :  { %178 = vst [vmem:[%s443_s1 + $0x198] sm:$0xff] %v171_v3  ;;  %179 = vst [vmem:[%s443_s1 + $0x1d8] sm:$0xff] %v171_v3 }
  0x12   :  { %181 = vst [vmem:[%s443_s1 + $0x20] sm:$0xff] %v180_v4  ;;  %182 = vst [vmem:[%s443_s1 + $0x60] sm:$0xff] %v180_v4 }
  0x13   :  { %183 = vst [vmem:[%s443_s1 + $0xa0] sm:$0xff] %v180_v4  ;;  %184 = vst [vmem:[%s443_s1 + $0xe0] sm:$0xff] %v180_v4 }
  0x14   :  { %185 = vst [vmem:[%s443_s1 + $0x120] sm:$0xff] %v180_v4  ;;  %186 = vst [vmem:[%s443_s1 + $0x160] sm:$0xff] %v180_v4 }
  0x15   :  { %187 = vst [vmem:[%s443_s1 + $0x1a0] sm:$0xff] %v180_v4  ;;  %188 = vst [vmem:[%s443_s1 + $0x1e0] sm:$0xff] %v180_v4 }
  0x16   :  { %190 = vst [vmem:[%s443_s1 + $0x28] sm:$0xff] %v189_v5  ;;  %191 = vst [vmem:[%s443_s1 + $0x68] sm:$0xff] %v189_v5 }
  0x17   :  { %192 = vst [vmem:[%s443_s1 + $0xa8] sm:$0xff] %v189_v5  ;;  %193 = vst [vmem:[%s443_s1 + $0xe8] sm:$0xff] %v189_v5 }
  0x18   :  { %194 = vst [vmem:[%s443_s1 + $0x128] sm:$0xff] %v189_v5  ;;  %195 = vst [vmem:[%s443_s1 + $0x168] sm:$0xff] %v189_v5 }
  0x19   :  { %196 = vst [vmem:[%s443_s1 + $0x1a8] sm:$0xff] %v189_v5  ;;  %197 = vst [vmem:[%s443_s1 + $0x1e8] sm:$0xff] %v189_v5 }
  0x1a   :  { %199 = vst [vmem:[%s443_s1 + $0x30] sm:$0xff] %v198_v6  ;;  %200 = vst [vmem:[%s443_s1 + $0x70] sm:$0xff] %v198_v6 }
  0x1b   :  { %201 = vst [vmem:[%s443_s1 + $0xb0] sm:$0xff] %v198_v6  ;;  %202 = vst [vmem:[%s443_s1 + $0xf0] sm:$0xff] %v198_v6 }
  0x1c   :  { %203 = vst [vmem:[%s443_s1 + $0x130] sm:$0xff] %v198_v6  ;;  %204 = vst [vmem:[%s443_s1 + $0x170] sm:$0xff] %v198_v6 }
  0x1d   :  { %205 = vst [vmem:[%s443_s1 + $0x1b0] sm:$0xff] %v198_v6  ;;  %206 = vst [vmem:[%s443_s1 + $0x1f0] sm:$0xff] %v198_v6 }
  0x1e   :  { %208 = vst [vmem:[%s443_s1 + $0x38] sm:$0xff] %v207_v7  ;;  %209 = vst [vmem:[%s443_s1 + $0x78] sm:$0xff] %v207_v7 }
  0x1f   :  { %210 = vst [vmem:[%s443_s1 + $0xb8] sm:$0xff] %v207_v7  ;;  %211 = vst [vmem:[%s443_s1 + $0xf8] sm:$0xff] %v207_v7 }
  0x20   :  { %212 = vst [vmem:[%s443_s1 + $0x138] sm:$0xff] %v207_v7  ;;  %213 = vst [vmem:[%s443_s1 + $0x178] sm:$0xff] %v207_v7 }
  0x21   :  { %214 = vst [vmem:[%s443_s1 + $0x1b8] sm:$0xff] %v207_v7  ;;  %215 = vst [vmem:[%s443_s1 + $0x1f8] sm:$0xff] %v207_v7 }

// kernel: tile.39
= control target key start
LH: loop header
LB: loop body
LE: loop exit
PB: predicated region body
PF: predicated region fallthrough
CT: control target
= control target key end

     0   :  { %vm4_vm0 = vcmask 1047556   ;;  %s869_s14 = smov 56   ;;  %s870_s26 = smov 48   ;;  %vm6_vm1 = vcmask 64512   ;;  %vm79_vm2 = vcmask 523712   ;;  %vm166_vm3 = vcmask 458112   ;;  %s1606_s0 = inlined_call_operand.vmem [shape: f32[8,8,8,8], index: 0, kind: input, shape index: {}]   ;;  %s1607_s1 = inlined_call_operand.vmem [shape: f32[64,64], index: 1, kind: output, shape index: {}]  }
   0x1   :  { %v706_v0 = vld [vmem:[%s1606_s0 + $0x47] ss:$8 sm:$0xf]   ;;  %v726_v24 = vld [vmem:[%s1606_s0 + $0x106] ss:$8 sm:$0xf]  }
   0x2   :  { %v707_v1 = vld [vmem:[%s1606_s0 + $0x47] ss:$8 sm:$0xf0]   ;;  %v727_v25 = vld [vmem:[%s1606_s0 + $0x106] ss:$8 sm:$0xf0]  }
   0x3   :  { %v97_v2 = vsel %vm4_vm0, %v707_v1, %v706_v0  ;;  %v701_v3 = vld [vmem:[%s1606_s0 + $0x7] ss:$8 sm:$0xf]   ;;  %v724_v26 = vld [vmem:[%s1606_s0 + $0x6] ss:$8 sm:$0xf]   ;;  %v173_v28 = vsel %vm4_vm0, %v727_v25, %v726_v24 }
   0x4   :  { %v702_v4 = vld [vmem:[%s1606_s0 + $0x7] ss:$8 sm:$0xf0]   ;;  %98 = vrot.lane.b32.xlu1 %v97_v2, %s869_s14  ;;  %v725_v27 = vld [vmem:[%s1606_s0 + $0x6] ss:$8 sm:$0xf0]  }
   0x5   :  { %v76_v5 = vsel %vm4_vm0, %v702_v4, %v701_v3  ;;  %v709_v6 = vld [vmem:[%s1606_s0 + $0x147] ss:$8 sm:$0xf]   ;;  %v163_v29 = vsel %vm4_vm0, %v725_v27, %v724_v26  ;;  %v732_v30 = vld [vmem:[%s1606_s0 + $0x146] ss:$8 sm:$0xf]  }
   0x6   :  { %v710_v7 = vld [vmem:[%s1606_s0 + $0x147] ss:$8 sm:$0xf0]   ;;  %77 = vrot.lane.b32.xlu0 %v76_v5, %s869_s14  ;;  %v733_v31 = vld [vmem:[%s1606_s0 + $0x146] ss:$8 sm:$0xf0]  }
   0x7   :  { %v108_v8 = vsel %vm4_vm0, %v710_v7, %v709_v6  ;;  %v703_v9 = vld [vmem:[%s1606_s0 + $0x107] ss:$8 sm:$0xf]   ;;  %v729_v32 = vld [vmem:[%s1606_s0 + $0x46] ss:$8 sm:$0xf]   ;;  %v195_v34 = vsel %vm4_vm0, %v733_v31, %v732_v30 }
   0x8   :  { %v704_v10 = vld [vmem:[%s1606_s0 + $0x107] ss:$8 sm:$0xf0]   ;;  %109 = vrot.lane.b32.xlu1 %v108_v8, %s869_s14  ;;  %v730_v33 = vld [vmem:[%s1606_s0 + $0x46] ss:$8 sm:$0xf0]  }
   0x9   :  { %v86_v11 = vsel %vm4_vm0, %v704_v10, %v703_v9  ;;  %v715_v12 = vld [vmem:[%s1606_s0 + $0x187] ss:$8 sm:$0xf]   ;;  %v184_v35 = vsel %vm4_vm0, %v730_v33, %v729_v32  ;;  %v738_v36 = vld [vmem:[%s1606_s0 + $0x186] ss:$8 sm:$0xf]  }
   0xa   :  { %v716_v13 = vld [vmem:[%s1606_s0 + $0x187] ss:$8 sm:$0xf0]   ;;  %87 = vrot.lane.b32.xlu0 %v86_v11, %s869_s14  ;;  %v739_v37 = vld [vmem:[%s1606_s0 + $0x186] ss:$8 sm:$0xf0]  }
   0xb   :  { %v712_v14 = vld [vmem:[%s1606_s0 + $0x87] ss:$8 sm:$0xf]   ;;  %v130_v16 = vsel %vm4_vm0, %v716_v13, %v715_v12  ;;  %v735_v38 = vld [vmem:[%s1606_s0 + $0x86] ss:$8 sm:$0xf]   ;;  %v217_v40 = vsel %vm4_vm0, %v739_v37, %v738_v36 }
   0xc   :  { %v713_v15 = vld [vmem:[%s1606_s0 + $0x87] ss:$8 sm:$0xf0]   ;;  %131 = vrot.lane.b32.xlu1 %v130_v16, %s869_s14  ;;  %v736_v39 = vld [vmem:[%s1606_s0 + $0x86] ss:$8 sm:$0xf0]  }
   0xd   :  { %v119_v17 = vsel %vm4_vm0, %v713_v15, %v712_v14  ;;  %v721_v18 = vld [vmem:[%s1606_s0 + $0x1c7] ss:$8 sm:$0xf]   ;;  %v206_v41 = vsel %vm4_vm0, %v736_v39, %v735_v38  ;;  %v744_v42 = vld [vmem:[%s1606_s0 + $0x1c6] ss:$8 sm:$0xf]  }
   0xe   :  { %v722_v19 = vld [vmem:[%s1606_s0 + $0x1c7] ss:$8 sm:$0xf0]   ;;  %120 = vrot.lane.b32.xlu0 %v119_v17, %s869_s14  ;;  %v745_v43 = vld [vmem:[%s1606_s0 + $0x1c6] ss:$8 sm:$0xf0]  }
   0xf   :  { %v718_v20 = vld [vmem:[%s1606_s0 + $0xc7] ss:$8 sm:$0xf]   ;;  %v152_v22 = vsel %vm4_vm0, %v722_v19, %v721_v18  ;;  %v741_v44 = vld [vmem:[%s1606_s0 + $0xc6] ss:$8 sm:$0xf]   ;;  %v239_v46 = vsel %vm4_vm0, %v745_v43, %v744_v42 }
  0x10   :  { %v719_v21 = vld [vmem:[%s1606_s0 + $0xc7] ss:$8 sm:$0xf0]   ;;  %153 = vrot.lane.b32.xlu1 %v152_v22, %s869_s14  ;;  %v742_v45 = vld [vmem:[%s1606_s0 + $0xc6] ss:$8 sm:$0xf0]  }
  0x11   :  { %v141_v23 = vsel %vm4_vm0, %v719_v21, %v718_v20  ;;  %v228_v47 = vsel %vm4_vm0, %v742_v45, %v741_v44  ;;  %v749_v48 = vld [vmem:[%s1606_s0 + $0x105] ss:$8 sm:$0xf]   ;;  %s871_s30 = smov 40   ;;  %s872_s5 = smov 32   ;;  %vm253_vm4 = vcmask 392512  }
  0x12   :  { %142 = vrot.lane.b32.xlu0 %v141_v23, %s869_s14  ;;  %v750_v49 = vld [vmem:[%s1606_s0 + $0x105] ss:$8 sm:$0xf0]   ;;  %v772_v8 = vld [vmem:[%s1606_s0 + $0x104] ss:$8 sm:$0xf]  }
  0x13   :  { %v747_v50 = vld [vmem:[%s1606_s0 + $0x5] ss:$8 sm:$0xf]   ;;  %v260_v52 = vsel %vm4_vm0, %v750_v49, %v749_v48  ;;  %v773_v9 = vld [vmem:[%s1606_s0 + $0x104] ss:$8 sm:$0xf0]  }
  0x14   :  { %174 = vrot.lane.b32.xlu1 %v173_v28, %s870_s26  ;;  %v748_v51 = vld [vmem:[%s1606_s0 + $0x5] ss:$8 sm:$0xf0]   ;;  %v770_v10 = vld [vmem:[%s1606_s0 + $0x4] ss:$8 sm:$0xf]   ;;  %v347_v12 = vsel %vm4_vm0, %v773_v9, %v772_v8 }
  0x15   :  { %v250_v53 = vsel %vm4_vm0, %v748_v51, %v747_v50  ;;  %v755_v54 = vld [vmem:[%s1606_s0 + $0x145] ss:$8 sm:$0xf]   ;;  %v771_v11 = vld [vmem:[%s1606_s0 + $0x4] ss:$8 sm:$0xf0]  }
  0x16   :  { %164 = vrot.lane.b32.xlu0 %v163_v29, %s870_s26  ;;  %v756_v55 = vld [vmem:[%s1606_s0 + $0x145] ss:$8 sm:$0xf0]   ;;  %v337_v13 = vsel %vm4_vm0, %v771_v11, %v770_v10  ;;  %v778_v14 = vld [vmem:[%s1606_s0 + $0x144] ss:$8 sm:$0xf]  }
  0x17   :  { %v752_v56 = vld [vmem:[%s1606_s0 + $0x45] ss:$8 sm:$0xf]   ;;  %v282_v58 = vsel %vm4_vm0, %v756_v55, %v755_v54  ;;  %v779_v15 = vld [vmem:[%s1606_s0 + $0x144] ss:$8 sm:$0xf0]  }
  0x18   :  { %196 = vrot.lane.b32.xlu1 %v195_v34, %s870_s26  ;;  %v753_v57 = vld [vmem:[%s1606_s0 + $0x45] ss:$8 sm:$0xf0]   ;;  %v775_v16 = vld [vmem:[%s1606_s0 + $0x44] ss:$8 sm:$0xf]   ;;  %v369_v18 = vsel %vm4_vm0, %v779_v15, %v778_v14 }
  0x19   :  { %v271_v59 = vsel %vm4_vm0, %v753_v57, %v752_v56  ;;  %v761_v60 = vld [vmem:[%s1606_s0 + $0x185] ss:$8 sm:$0xf]   ;;  %v776_v17 = vld [vmem:[%s1606_s0 + $0x44] ss:$8 sm:$0xf0]  }
  0x1a   :  { %185 = vrot.lane.b32.xlu0 %v184_v35, %s870_s26  ;;  %v762_v61 = vld [vmem:[%s1606_s0 + $0x185] ss:$8 sm:$0xf0]   ;;  %v358_v19 = vsel %vm4_vm0, %v776_v17, %v775_v16  ;;  %v784_v20 = vld [vmem:[%s1606_s0 + $0x184] ss:$8 sm:$0xf]  }
  0x1b   :  { %v758_v62 = vld [vmem:[%s1606_s0 + $0x85] ss:$8 sm:$0xf]   ;;  %v304_v0 = vsel %vm4_vm0, %v762_v61, %v761_v60  ;;  %v785_v21 = vld [vmem:[%s1606_s0 + $0x184] ss:$8 sm:$0xf0]  }
  0x1c   :  { %218 = vrot.lane.b32.xlu1 %v217_v40, %s870_s26  ;;  %v759_v63 = vld [vmem:[%s1606_s0 + $0x85] ss:$8 sm:$0xf0]   ;;  %v781_v22 = vld [vmem:[%s1606_s0 + $0x84] ss:$8 sm:$0xf]   ;;  %v391_v24 = vsel %vm4_vm0, %v785_v21, %v784_v20 }
  0x1d   :  { %v293_v1 = vsel %vm4_vm0, %v759_v63, %v758_v62  ;;  %v767_v2 = vld [vmem:[%s1606_s0 + $0x1c5] ss:$8 sm:$0xf]   ;;  %v782_v23 = vld [vmem:[%s1606_s0 + $0x84] ss:$8 sm:$0xf0]  }
  0x1e   :  { %207 = vrot.lane.b32.xlu0 %v206_v41, %s870_s26  ;;  %v768_v3 = vld [vmem:[%s1606_s0 + $0x1c5] ss:$8 sm:$0xf0]   ;;  %v790_v25 = vld [vmem:[%s1606_s0 + $0x1c4] ss:$8 sm:$0xf]   ;;  %v380_v27 = vsel %vm4_vm0, %v782_v23, %v781_v22 }
  0x1f   :  { %v764_v4 = vld [vmem:[%s1606_s0 + $0xc5] ss:$8 sm:$0xf]   ;;  %v326_v6 = vsel %vm4_vm0, %v768_v3, %v767_v2  ;;  %v791_v26 = vld [vmem:[%s1606_s0 + $0x1c4] ss:$8 sm:$0xf0]  }
  0x20   :  { %240 = vrot.lane.b32.xlu1 %v239_v46, %s870_s26  ;;  %v765_v5 = vld [vmem:[%s1606_s0 + $0xc5] ss:$8 sm:$0xf0]   ;;  %v787_v28 = vld [vmem:[%s1606_s0 + $0xc4] ss:$8 sm:$0xf]   ;;  %v413_v35 = vsel %vm4_vm0, %v791_v26, %v790_v25 }
  0x21   :  { %v315_v7 = vsel %vm4_vm0, %v765_v5, %v764_v4  ;;  %v788_v29 = vld [vmem:[%s1606_s0 + $0xc4] ss:$8 sm:$0xf0]   ;;  %v680_v30 = vld [vmem:[%s1606_s0 + $0x40] ss:$8 sm:$0xf]  }
  0x22   :  { %229 = vrot.lane.b32.xlu0 %v228_v47, %s870_s26  ;;  %v795_v31 = vld [vmem:[%s1606_s0 + $0x103] ss:$8 sm:$0xf]   ;;  %v681_v33 = vld [vmem:[%s1606_s0 + $0x40] ss:$8 sm:$0xf0]   ;;  %v402_v41 = vsel %vm4_vm0, %v788_v29, %v787_v28 }
  0x23   :  { %v796_v32 = vld [vmem:[%s1606_s0 + $0x103] ss:$8 sm:$0xf0]   ;;  %v2_v34 = vld [vmem:[%s1606_s0] ss:$8 sm:$0xf]   ;;  %v13_v38 = vsel %vm4_vm0, %v681_v33, %v680_v30 }
  0x24   :  { %261 = vrot.lane.b32.xlu1 %v260_v52, %s871_s30  ;;  %v793_v36 = vld [vmem:[%s1606_s0 + $0x3] ss:$8 sm:$0xf]   ;;  %v3_v39 = vld [vmem:[%s1606_s0] ss:$8 sm:$0xf0]  }
  0x25   :  { %v794_v37 = vld [vmem:[%s1606_s0 + $0x3] ss:$8 sm:$0xf0]   ;;  %v692_v40 = vld [vmem:[%s1606_s0 + $0x140] ss:$8 sm:$0xf]   ;;  %v5_v42 = vsel %vm4_vm0, %v3_v39, %v2_v34 }
  0x26   :  { %251 = vrot.lane.b32.xlu0 %v250_v53, %s871_s30  ;;  %682 = vst.msk [vmem:[%s1607_s1 + $0x8] sm:$0xff] %vm6_vm1, %v13_v38   ;;  %v693_v43 = vld [vmem:[%s1606_s0 + $0x140] ss:$8 sm:$0xf0]   ;;  %7 = vst.msk [vmem:[%s1607_s1] sm:$0xff] %vm6_vm1, %v5_v42   ;;  %v434_v53 = vsel %vm4_vm0, %v796_v32, %v795_v31  ;;  %s873_s25 = smov 24  }
  0x27   :  { %v689_v44 = vld [vmem:[%s1606_s0 + $0x100] ss:$8 sm:$0xf]   ;;  %v49_v45 = vsel %vm4_vm0, %v693_v43, %v692_v40  ;;  %v801_v48 = vld [vmem:[%s1606_s0 + $0x143] ss:$8 sm:$0xf]  }
  0x28   :  { %283 = vrot.lane.b32.xlu1 %v282_v58, %s871_s30  ;;  %v690_v46 = vld [vmem:[%s1606_s0 + $0x100] ss:$8 sm:$0xf0]   ;;  %v802_v49 = vld [vmem:[%s1606_s0 + $0x143] ss:$8 sm:$0xf0]   ;;  %v424_v58 = vsel %vm4_vm0, %v794_v37, %v793_v36 }
  0x29   :  { %v695_v47 = vld [vmem:[%s1606_s0 + $0x180] ss:$8 sm:$0xf]   ;;  %694 = vst.msk [vmem:[%s1607_s1 + $0x28] sm:$0xff] %vm6_vm1, %v49_v45   ;;  %v40_v50 = vsel %vm4_vm0, %v690_v46, %v689_v44  ;;  %v456_v2 = vsel %vm4_vm0, %v802_v49, %v801_v48  ;;  %s874_s4 = smov 16   ;;  %s875_s8 = smov 8  }
  0x2a   :  { %272 = vrot.lane.b32.xlu0 %v271_v59, %s871_s30  ;;  %v696_v51 = vld [vmem:[%s1606_s0 + $0x180] ss:$8 sm:$0xf0]   ;;  %v798_v54 = vld [vmem:[%s1606_s0 + $0x43] ss:$8 sm:$0xf]  }
  0x2b   :  { %v683_v52 = vld [vmem:[%s1606_s0 + $0x80] ss:$8 sm:$0xf]   ;;  %691 = vst.msk [vmem:[%s1607_s1 + $0x20] sm:$0xff] %vm6_vm1, %v40_v50   ;;  %v58_v55 = vsel %vm4_vm0, %v696_v51, %v695_v47  ;;  %vm340_vm5 = vcmask 326912   ;;  %vm427_vm6 = vcmask 261312  }
  0x2c   :  { %305 = vrot.lane.b32.xlu1 %v304_v0, %s871_s30  ;;  %v684_v56 = vld [vmem:[%s1606_s0 + $0x80] ss:$8 sm:$0xf0]   ;;  %697 = vst.msk [vmem:[%s1607_s1 + $0x30] sm:$0xff] %vm6_vm1, %v58_v55   ;;  %vm514_vm7 = vcmask 195712   ;;  %vm601_vm8 = vcmask 130112  }
  0x2d   :  { %v698_v57 = vld [vmem:[%s1606_s0 + $0x1c0] ss:$8 sm:$0xf]   ;;  %v22_v59 = vsel %vm4_vm0, %v684_v56, %v683_v52  ;;  %v799_v62 = vld [vmem:[%s1606_s0 + $0x43] ss:$8 sm:$0xf0]  }
  0x2e   :  { %294 = vrot.lane.b32.xlu0 %v293_v1, %s871_s30  ;;  %v699_v60 = vld [vmem:[%s1606_s0 + $0x1c0] ss:$8 sm:$0xf0]   ;;  %685 = vst.msk [vmem:[%s1607_s1 + $0x10] sm:$0xff] %vm6_vm1, %v22_v59   ;;  %v445_v3 = vsel %vm4_vm0, %v799_v62, %v798_v54 }
  0x2f   :  { %v686_v61 = vld [vmem:[%s1606_s0 + $0xc0] ss:$8 sm:$0xf]   ;;  %v67_v63 = vsel %vm4_vm0, %v699_v60, %v698_v57  ;;  %v807_v4 = vld [vmem:[%s1606_s0 + $0x183] ss:$8 sm:$0xf]  }
  0x30   :  { %327 = vrot.lane.b32.xlu1 %v326_v6, %s871_s30  ;;  %v687_v0 = vld [vmem:[%s1606_s0 + $0xc0] ss:$8 sm:$0xf0]   ;;  %700 = vst.msk [vmem:[%s1607_s1 + $0x38] sm:$0xff] %vm6_vm1, %v67_v63  }
  0x31   :  { %v31_v1 = vsel %vm4_vm0, %v687_v0, %v686_v61  ;;  %v808_v5 = vld [vmem:[%s1606_s0 + $0x183] ss:$8 sm:$0xf0]   ;;  %v818_v16 = vld [vmem:[%s1606_s0 + $0x102] ss:$8 sm:$0xf]  }
  0x32   :  { %316 = vrot.lane.b32.xlu0 %v315_v7, %s871_s30  ;;  %688 = vst.msk [vmem:[%s1607_s1 + $0x18] sm:$0xff] %vm6_vm1, %v31_v1   ;;  %v804_v6 = vld [vmem:[%s1606_s0 + $0x83] ss:$8 sm:$0xf]   ;;  %v478_v8 = vsel %vm4_vm0, %v808_v5, %v807_v4 }
  0x33   :  { %v805_v7 = vld [vmem:[%s1606_s0 + $0x83] ss:$8 sm:$0xf0]   ;;  %v819_v17 = vld [vmem:[%s1606_s0 + $0x102] ss:$8 sm:$0xf0]  }
  0x34   :  { %348 = vrot.lane.b32.xlu1 %v347_v12, %s872_s5  ;;  %v467_v9 = vsel %vm4_vm0, %v805_v7, %v804_v6  ;;  %v813_v10 = vld [vmem:[%s1606_s0 + $0x1c3] ss:$8 sm:$0xf]   ;;  %v521_v20 = vsel %vm4_vm0, %v819_v17, %v818_v16  ;;  %v824_v22 = vld [vmem:[%s1606_s0 + $0x142] ss:$8 sm:$0xf]  }
  0x35   :  { %v814_v11 = vld [vmem:[%s1606_s0 + $0x1c3] ss:$8 sm:$0xf0]   ;;  %v825_v23 = vld [vmem:[%s1606_s0 + $0x142] ss:$8 sm:$0xf0]  }
  0x36   :  { %338 = vrot.lane.b32.xlu0 %v337_v13, %s872_s5  ;;  %v810_v12 = vld [vmem:[%s1606_s0 + $0xc3] ss:$8 sm:$0xf]   ;;  %v500_v14 = vsel %vm4_vm0, %v814_v11, %v813_v10  ;;  %v822_v25 = vld [vmem:[%s1606_s0 + $0x42] ss:$8 sm:$0xf0]   ;;  %v543_v26 = vsel %vm4_vm0, %v825_v23, %v824_v22 }
  0x37   :  { %v811_v13 = vld [vmem:[%s1606_s0 + $0xc3] ss:$8 sm:$0xf0]   ;;  %v830_v28 = vld [vmem:[%s1606_s0 + $0x182] ss:$8 sm:$0xf]  }
  0x38   :  { %370 = vrot.lane.b32.xlu1 %v369_v18, %s872_s5  ;;  %v489_v15 = vsel %vm4_vm0, %v811_v13, %v810_v12  ;;  %v816_v18 = vld [vmem:[%s1606_s0 + $0x2] ss:$8 sm:$0xf]   ;;  %v841_v40 = vld [vmem:[%s1606_s0 + $0x101] ss:$8 sm:$0xf]  }
  0x39   :  { %v831_v29 = vld [vmem:[%s1606_s0 + $0x182] ss:$8 sm:$0xf0]   ;;  %v839_v42 = vld [vmem:[%s1606_s0 + $0x1] ss:$8 sm:$0xf]  }
  0x3a   :  { %359 = vrot.lane.b32.xlu0 %v358_v19, %s872_s5  ;;  %v817_v19 = vld [vmem:[%s1606_s0 + $0x2] ss:$8 sm:$0xf0]   ;;  %v565_v32 = vsel %vm4_vm0, %v831_v29, %v830_v28  ;;  %v840_v43 = vld [vmem:[%s1606_s0 + $0x1] ss:$8 sm:$0xf0]  }
  0x3b   :  { %v511_v21 = vsel %vm4_vm0, %v817_v19, %v816_v18  ;;  %v827_v30 = vld [vmem:[%s1606_s0 + $0x82] ss:$8 sm:$0xf]   ;;  %v598_v45 = vsel %vm4_vm0, %v840_v43, %v839_v42  ;;  %v847_v46 = vld [vmem:[%s1606_s0 + $0x141] ss:$8 sm:$0xf]  }
  0x3c   :  { %392 = vrot.lane.b32.xlu1 %v391_v24, %s872_s5  ;;  %v821_v24 = vld [vmem:[%s1606_s0 + $0x42] ss:$8 sm:$0xf]   ;;  %v848_v47 = vld [vmem:[%s1606_s0 + $0x141] ss:$8 sm:$0xf0]  }
  0x3d   :  { %v828_v31 = vld [vmem:[%s1606_s0 + $0x82] ss:$8 sm:$0xf0]   ;;  %v844_v48 = vld [vmem:[%s1606_s0 + $0x41] ss:$8 sm:$0xf]   ;;  %v630_v50 = vsel %vm4_vm0, %v848_v47, %v847_v46 }
  0x3e   :  { %381 = vrot.lane.b32.xlu0 %v380_v27, %s872_s5  ;;  %v532_v27 = vsel %vm4_vm0, %v822_v25, %v821_v24  ;;  %v554_v33 = vsel %vm4_vm0, %v828_v31, %v827_v30  ;;  %v836_v34 = vld [vmem:[%s1606_s0 + $0x1c2] ss:$8 sm:$0xf]   ;;  %v845_v49 = vld [vmem:[%s1606_s0 + $0x41] ss:$8 sm:$0xf0]  }
  0x3f   :  { %v833_v36 = vld [vmem:[%s1606_s0 + $0xc2] ss:$8 sm:$0xf]   ;;  %v619_v51 = vsel %vm4_vm0, %v845_v49, %v844_v48  ;;  %v853_v52 = vld [vmem:[%s1606_s0 + $0x181] ss:$8 sm:$0xf]  }
  0x40   :  { %414 = vrot.lane.b32.xlu1 %v413_v35, %s872_s5  ;;  %v837_v35 = vld [vmem:[%s1606_s0 + $0x1c2] ss:$8 sm:$0xf0]   ;;  %v850_v54 = vld [vmem:[%s1606_s0 + $0x81] ss:$8 sm:$0xf]  }
  0x41   :  { %v834_v37 = vld [vmem:[%s1606_s0 + $0xc2] ss:$8 sm:$0xf0]   ;;  %v587_v38 = vsel %vm4_vm0, %v837_v35, %v836_v34  ;;  %v851_v55 = vld [vmem:[%s1606_s0 + $0x81] ss:$8 sm:$0xf0]  }
  0x42   :  { %403 = vrot.lane.b32.xlu0 %v402_v41, %s872_s5  ;;  %v576_v39 = vsel %vm4_vm0, %v834_v37, %v833_v36  ;;  %v842_v41 = vld [vmem:[%s1606_s0 + $0x101] ss:$8 sm:$0xf0]   ;;  %v641_v57 = vsel %vm4_vm0, %v851_v55, %v850_v54 }
  0x43   :  { %v608_v44 = vsel %vm4_vm0, %v842_v41, %v841_v40  ;;  %v860_v59 = vld [vmem:[%s1606_s0 + $0x1c1] ss:$8 sm:$0xf0]  }
  0x44   :  { %435 = vrot.lane.b32.xlu1 %v434_v53, %s873_s25  ;;  %v854_v53 = vld [vmem:[%s1606_s0 + $0x181] ss:$8 sm:$0xf0]  }
  0x45   :  { %v652_v56 = vsel %vm4_vm0, %v854_v53, %v853_v52  ;;  %v856_v60 = vld [vmem:[%s1606_s0 + $0xc1] ss:$8 sm:$0xf]  }
  0x46   :  { %425 = vrot.lane.b32.xlu0 %v424_v58, %s873_s25  ;;  %v859_v58 = vld [vmem:[%s1606_s0 + $0x1c1] ss:$8 sm:$0xf]  }
  0x47   :  { %v857_v61 = vld [vmem:[%s1606_s0 + $0xc1] ss:$8 sm:$0xf0]   ;;  %v674_v62 = vsel %vm4_vm0, %v860_v59, %v859_v58 }
  0x48   :  { %457 = vrot.lane.b32.xlu1 %v456_v2, %s873_s25  ;;  %v663_v63 = vsel %vm4_vm0, %v857_v61, %v856_v60 }
  0x4a   :  { %446 = vrot.lane.b32.xlu0 %v445_v3, %s873_s25 }
  0x4c   :  { %479 = vrot.lane.b32.xlu1 %v478_v8, %s873_s25 }
  0x4e   :  { %468 = vrot.lane.b32.xlu0 %v467_v9, %s873_s25 }
  0x50   :  { %501 = vrot.lane.b32.xlu1 %v500_v14, %s873_s25 }
  0x52   :  { %490 = vrot.lane.b32.xlu0 %v489_v15, %s873_s25 }
  0x54   :  { %522 = vrot.lane.b32.xlu1 %v521_v20, %s874_s4 }
  0x56   :  { %512 = vrot.lane.b32.xlu0 %v511_v21, %s874_s4 }
  0x58   :  { %544 = vrot.lane.b32.xlu1 %v543_v26, %s874_s4 }
  0x5a   :  { %533 = vrot.lane.b32.xlu0 %v532_v27, %s874_s4 }
  0x5c   :  { %566 = vrot.lane.b32.xlu1 %v565_v32, %s874_s4 }
  0x5e   :  { %555 = vrot.lane.b32.xlu0 %v554_v33, %s874_s4 }
  0x60   :  { %588 = vrot.lane.b32.xlu1 %v587_v38, %s874_s4 }
  0x62   :  { %577 = vrot.lane.b32.xlu0 %v576_v39, %s874_s4 }
  0x64   :  { %609 = vrot.lane.b32.xlu1 %v608_v44, %s875_s8 }
  0x66   :  { %599 = vrot.lane.b32.xlu0 %v598_v45, %s875_s8 }
  0x68   :  { %631 = vrot.lane.b32.xlu1 %v630_v50, %s875_s8 }
  0x6a   :  { %620 = vrot.lane.b32.xlu0 %v619_v51, %s875_s8 }
  0x6c   :  { %653 = vrot.lane.b32.xlu1 %v652_v56, %s875_s8 }
  0x6e   :  { %642 = vrot.lane.b32.xlu0 %v641_v57, %s875_s8 }
  0x70   :  { %675 = vrot.lane.b32.xlu1 %v674_v62, %s875_s8 }
  0x72   :  { %664 = vrot.lane.b32.xlu0 %v663_v63, %s875_s8 }
  0x76   :  { %v99_v0 = vpop.permute.xlu1 %98  }
  0x77   :  { %708 = vst.msk [vmem:[%s1607_s1 + $0x8] sm:$0xff] %vm79_vm2, %v99_v0  }
  0x78   :  { %v78_v1 = vpop.permute.xlu0 %77  }
  0x79   :  { %80 = vst.msk [vmem:[%s1607_s1] sm:$0xff] %vm79_vm2, %v78_v1  }
  0x7a   :  { %v110_v2 = vpop.permute.xlu1 %109  }
  0x7b   :  { %711 = vst.msk [vmem:[%s1607_s1 + $0x28] sm:$0xff] %vm79_vm2, %v110_v2  }
  0x7c   :  { %v88_v3 = vpop.permute.xlu0 %87  }
  0x7d   :  { %705 = vst.msk [vmem:[%s1607_s1 + $0x20] sm:$0xff] %vm79_vm2, %v88_v3  }
  0x7e   :  { %v132_v4 = vpop.permute.xlu1 %131  }
  0x7f   :  { %717 = vst.msk [vmem:[%s1607_s1 + $0x30] sm:$0xff] %vm79_vm2, %v132_v4  }
  0x80   :  { %v121_v5 = vpop.permute.xlu0 %120  }
  0x81   :  { %714 = vst.msk [vmem:[%s1607_s1 + $0x10] sm:$0xff] %vm79_vm2, %v121_v5  }
  0x82   :  { %v154_v6 = vpop.permute.xlu1 %153  }
  0x83   :  { %723 = vst.msk [vmem:[%s1607_s1 + $0x38] sm:$0xff] %vm79_vm2, %v154_v6  }
  0x84   :  { %v143_v7 = vpop.permute.xlu0 %142  }
  0x85   :  { %720 = vst.msk [vmem:[%s1607_s1 + $0x18] sm:$0xff] %vm79_vm2, %v143_v7  }
  0x86   :  { %v175_v8 = vpop.permute.xlu1 %174  }
  0x87   :  { %728 = vst.msk [vmem:[%s1607_s1 + $0x20] sm:$0xff] %vm166_vm3, %v175_v8  }
  0x88   :  { %v165_v9 = vpop.permute.xlu0 %164  }
  0x89   :  { %167 = vst.msk [vmem:[%s1607_s1] sm:$0xff] %vm166_vm3, %v165_v9  }
  0x8a   :  { %v197_v10 = vpop.permute.xlu1 %196  }
  0x8b   :  { %734 = vst.msk [vmem:[%s1607_s1 + $0x28] sm:$0xff] %vm166_vm3, %v197_v10  }
  0x8c   :  { %v186_v11 = vpop.permute.xlu0 %185  }
  0x8d   :  { %731 = vst.msk [vmem:[%s1607_s1 + $0x8] sm:$0xff] %vm166_vm3, %v186_v11  }
  0x8e   :  { %v219_v12 = vpop.permute.xlu1 %218  }
  0x8f   :  { %740 = vst.msk [vmem:[%s1607_s1 + $0x30] sm:$0xff] %vm166_vm3, %v219_v12  }
  0x90   :  { %v208_v13 = vpop.permute.xlu0 %207  }
  0x91   :  { %737 = vst.msk [vmem:[%s1607_s1 + $0x10] sm:$0xff] %vm166_vm3, %v208_v13  }
  0x92   :  { %v241_v14 = vpop.permute.xlu1 %240  }
  0x93   :  { %746 = vst.msk [vmem:[%s1607_s1 + $0x38] sm:$0xff] %vm166_vm3, %v241_v14  }
  0x94   :  { %v230_v15 = vpop.permute.xlu0 %229  }
  0x95   :  { %743 = vst.msk [vmem:[%s1607_s1 + $0x18] sm:$0xff] %vm166_vm3, %v230_v15  }
  0x96   :  { %v262_v16 = vpop.permute.xlu1 %261  }
  0x97   :  { %751 = vst.msk [vmem:[%s1607_s1 + $0x20] sm:$0xff] %vm253_vm4, %v262_v16  }
  0x98   :  { %v252_v17 = vpop.permute.xlu0 %251  }
  0x99   :  { %254 = vst.msk [vmem:[%s1607_s1] sm:$0xff] %vm253_vm4, %v252_v17  }
  0x9a   :  { %v284_v18 = vpop.permute.xlu1 %283  }
  0x9b   :  { %757 = vst.msk [vmem:[%s1607_s1 + $0x28] sm:$0xff] %vm253_vm4, %v284_v18  }
  0x9c   :  { %v273_v19 = vpop.permute.xlu0 %272  }
  0x9d   :  { %754 = vst.msk [vmem:[%s1607_s1 + $0x8] sm:$0xff] %vm253_vm4, %v273_v19  }
  0x9e   :  { %v306_v20 = vpop.permute.xlu1 %305  }
  0x9f   :  { %763 = vst.msk [vmem:[%s1607_s1 + $0x30] sm:$0xff] %vm253_vm4, %v306_v20  }
  0xa0   :  { %v295_v21 = vpop.permute.xlu0 %294  }
  0xa1   :  { %760 = vst.msk [vmem:[%s1607_s1 + $0x10] sm:$0xff] %vm253_vm4, %v295_v21  }
  0xa2   :  { %v328_v22 = vpop.permute.xlu1 %327  }
  0xa3   :  { %769 = vst.msk [vmem:[%s1607_s1 + $0x38] sm:$0xff] %vm253_vm4, %v328_v22  }
  0xa4   :  { %v317_v23 = vpop.permute.xlu0 %316  }
  0xa5   :  { %766 = vst.msk [vmem:[%s1607_s1 + $0x18] sm:$0xff] %vm253_vm4, %v317_v23  }
  0xa6   :  { %v349_v24 = vpop.permute.xlu1 %348  }
  0xa7   :  { %774 = vst.msk [vmem:[%s1607_s1 + $0x20] sm:$0xff] %vm340_vm5, %v349_v24  }
  0xa8   :  { %v339_v25 = vpop.permute.xlu0 %338  }
  0xa9   :  { %341 = vst.msk [vmem:[%s1607_s1] sm:$0xff] %vm340_vm5, %v339_v25  }
  0xaa   :  { %v371_v26 = vpop.permute.xlu1 %370  }
  0xab   :  { %780 = vst.msk [vmem:[%s1607_s1 + $0x28] sm:$0xff] %vm340_vm5, %v371_v26  }
  0xac   :  { %v360_v27 = vpop.permute.xlu0 %359  }
  0xad   :  { %777 = vst.msk [vmem:[%s1607_s1 + $0x8] sm:$0xff] %vm340_vm5, %v360_v27  }
  0xae   :  { %v393_v28 = vpop.permute.xlu1 %392  }
  0xaf   :  { %786 = vst.msk [vmem:[%s1607_s1 + $0x30] sm:$0xff] %vm340_vm5, %v393_v28  }
  0xb0   :  { %v382_v29 = vpop.permute.xlu0 %381  }
  0xb1   :  { %783 = vst.msk [vmem:[%s1607_s1 + $0x10] sm:$0xff] %vm340_vm5, %v382_v29  }
  0xb2   :  { %v415_v30 = vpop.permute.xlu1 %414  }
  0xb3   :  { %792 = vst.msk [vmem:[%s1607_s1 + $0x38] sm:$0xff] %vm340_vm5, %v415_v30  }
  0xb4   :  { %v404_v31 = vpop.permute.xlu0 %403  }
  0xb5   :  { %789 = vst.msk [vmem:[%s1607_s1 + $0x18] sm:$0xff] %vm340_vm5, %v404_v31  }
  0xb6   :  { %v436_v32 = vpop.permute.xlu1 %435  }
  0xb7   :  { %797 = vst.msk [vmem:[%s1607_s1 + $0x20] sm:$0xff] %vm427_vm6, %v436_v32  }
  0xb8   :  { %v426_v33 = vpop.permute.xlu0 %425  }
  0xb9   :  { %428 = vst.msk [vmem:[%s1607_s1] sm:$0xff] %vm427_vm6, %v426_v33  }
  0xba   :  { %v458_v34 = vpop.permute.xlu1 %457  }
  0xbb   :  { %803 = vst.msk [vmem:[%s1607_s1 + $0x28] sm:$0xff] %vm427_vm6, %v458_v34  }
  0xbc   :  { %v447_v35 = vpop.permute.xlu0 %446  }
  0xbd   :  { %800 = vst.msk [vmem:[%s1607_s1 + $0x8] sm:$0xff] %vm427_vm6, %v447_v35  }
  0xbe   :  { %v480_v36 = vpop.permute.xlu1 %479  }
  0xbf   :  { %809 = vst.msk [vmem:[%s1607_s1 + $0x30] sm:$0xff] %vm427_vm6, %v480_v36  }
  0xc0   :  { %v469_v37 = vpop.permute.xlu0 %468  }
  0xc1   :  { %806 = vst.msk [vmem:[%s1607_s1 + $0x10] sm:$0xff] %vm427_vm6, %v469_v37  }
  0xc2   :  { %v502_v38 = vpop.permute.xlu1 %501  }
  0xc3   :  { %815 = vst.msk [vmem:[%s1607_s1 + $0x38] sm:$0xff] %vm427_vm6, %v502_v38  }
  0xc4   :  { %v491_v39 = vpop.permute.xlu0 %490  }
  0xc5   :  { %812 = vst.msk [vmem:[%s1607_s1 + $0x18] sm:$0xff] %vm427_vm6, %v491_v39  }
  0xc6   :  { %v523_v40 = vpop.permute.xlu1 %522  }
  0xc7   :  { %820 = vst.msk [vmem:[%s1607_s1 + $0x20] sm:$0xff] %vm514_vm7, %v523_v40  }
  0xc8   :  { %v513_v41 = vpop.permute.xlu0 %512  }
  0xc9   :  { %515 = vst.msk [vmem:[%s1607_s1] sm:$0xff] %vm514_vm7, %v513_v41  }
  0xca   :  { %v545_v42 = vpop.permute.xlu1 %544  }
  0xcb   :  { %826 = vst.msk [vmem:[%s1607_s1 + $0x28] sm:$0xff] %vm514_vm7, %v545_v42  }
  0xcc   :  { %v534_v43 = vpop.permute.xlu0 %533  }
  0xcd   :  { %823 = vst.msk [vmem:[%s1607_s1 + $0x8] sm:$0xff] %vm514_vm7, %v534_v43  }
  0xce   :  { %v567_v44 = vpop.permute.xlu1 %566  }
  0xcf   :  { %832 = vst.msk [vmem:[%s1607_s1 + $0x30] sm:$0xff] %vm514_vm7, %v567_v44  }
  0xd0   :  { %v556_v45 = vpop.permute.xlu0 %555  }
  0xd1   :  { %829 = vst.msk [vmem:[%s1607_s1 + $0x10] sm:$0xff] %vm514_vm7, %v556_v45  }
  0xd2   :  { %v589_v46 = vpop.permute.xlu1 %588  }
  0xd3   :  { %838 = vst.msk [vmem:[%s1607_s1 + $0x38] sm:$0xff] %vm514_vm7, %v589_v46  }
  0xd4   :  { %v578_v47 = vpop.permute.xlu0 %577  }
  0xd5   :  { %835 = vst.msk [vmem:[%s1607_s1 + $0x18] sm:$0xff] %vm514_vm7, %v578_v47  }
  0xd6   :  { %v610_v48 = vpop.permute.xlu1 %609  }
  0xd7   :  { %843 = vst.msk [vmem:[%s1607_s1 + $0x20] sm:$0xff] %vm601_vm8, %v610_v48  }
  0xd8   :  { %v600_v49 = vpop.permute.xlu0 %599  }
  0xd9   :  { %602 = vst.msk [vmem:[%s1607_s1] sm:$0xff] %vm601_vm8, %v600_v49  }
  0xda   :  { %v632_v50 = vpop.permute.xlu1 %631  }
  0xdb   :  { %849 = vst.msk [vmem:[%s1607_s1 + $0x28] sm:$0xff] %vm601_vm8, %v632_v50  }
  0xdc   :  { %v621_v51 = vpop.permute.xlu0 %620  }
  0xdd   :  { %846 = vst.msk [vmem:[%s1607_s1 + $0x8] sm:$0xff] %vm601_vm8, %v621_v51  }
  0xde   :  { %v654_v52 = vpop.permute.xlu1 %653  }
  0xdf   :  { %855 = vst.msk [vmem:[%s1607_s1 + $0x30] sm:$0xff] %vm601_vm8, %v654_v52  }
  0xe0   :  { %v643_v53 = vpop.permute.xlu0 %642  }
  0xe1   :  { %852 = vst.msk [vmem:[%s1607_s1 + $0x10] sm:$0xff] %vm601_vm8, %v643_v53  }
  0xe2   :  { %v676_v54 = vpop.permute.xlu1 %675  }
  0xe3   :  { %861 = vst.msk [vmem:[%s1607_s1 + $0x38] sm:$0xff] %vm601_vm8, %v676_v54  }
  0xe4   :  { %v665_v55 = vpop.permute.xlu0 %664  }
  0xe5   :  { %858 = vst.msk [vmem:[%s1607_s1 + $0x18] sm:$0xff] %vm601_vm8, %v665_v55  }

// kernel: conv_component_3d.3
= control target key start
LH: loop header
LB: loop body
LE: loop exit
PB: predicated region body
PF: predicated region fallthrough
CT: control target
= control target key end

     0   :  { %s665_s18 = smov 0   ;;  %s667_s19 = smov 0   ;;  %s820_s0 = inlined_call_operand.vmem [shape: f32[2,8,8,64], index: 0, kind: input, shape index: {}]   ;;  %s821_s1 = inlined_call_operand.vmem [shape: f32[16,2,64], index: 1, kind: input, shape index: {}]   ;;  %s822_s2 = inlined_call_operand.vmem [shape: f32[64,64], index: 2, kind: input, shape index: {}]   ;;  %s823_s3 = inlined_call_operand.vmem [shape: f32[1,64], index: 3, kind: input, shape index: {}]   ;;  %s824_s4 = inlined_call_operand.vmem [shape: f32[1,64], index: 4, kind: input, shape index: {}]   ;;  %s825_s5 = inlined_call_operand.vmem [shape: f32[2,8,8,64], index: 5, kind: output, shape index: {}]  }
   0x1   :  { %s669_s20 = smov 0   ;;  %s671_s21 = smov 0  }
   0x2   :  { %s673_s22 = smov 0  }
   0x3 LB: > { %s24_s23 = sadd.s32 1, %s623_s20  ;;  %s27_s24 = sadd.s32 1, %s627_s21  ;;  %s631_s22 = sphi %s673_s22, %s15_s22   ;;  %s627_s21 = sphi %s671_s21, %s829_s21   ;;  %s623_s20 = sphi %s669_s20, %s828_s20   ;;  %s619_s19 = sphi %s667_s19, %s827_s19   ;;  %s615_s18 = sphi %s665_s18, %s826_s18  }
   0x4   : > { %p25_p0 = scmp.ge.s32.totalorder %s24_s23, 8  ;;  %p512_p1 = scmp.ge.s32.totalorder %s631_s22, 1 }
   0x5   : > { %p206_p2 = scmp.lt.s32.totalorder %s631_s22, 17 }
   0x6   : > { %s831_s23 = smov (%p25_p0, %s24_s23), 0  ;;  %s833_s24 = smov (!%p25_p0, %s27_s24), %s627_s21 }
   0x7   : > { %p207_p3 = pnand %p512_p1, %p206_p2  ;;  %p29_p4 = scmp.ge.s32.totalorder %s833_s24, 2 }
   0x8   : > { %p240_p5 = scmp.lt.s32.totalorder (!%p207_p3), %s619_s19, 1  ;;  %p242_p6 = scmp.lt.s32.totalorder (!%p207_p3), %s615_s18, 7 }
   0x9   : > { %s835_s24 = smov (%p29_p4, %s833_s24), 0  ;;  %210 = sbr.rel (%p207_p3) target bundleno = 278 (0x116), region = 40 }
   0xe   : > { %v311_v0 = vld [vmem:[%s822_s2 + $0x38] sm:$0xff]  ;;  %v633_v1 = vmov 0.0   ;;  %v310_v2 = vld [vmem:[%s822_s2 + $0x30] sm:$0xff]  ;;  %vm634_vm0 = vmmov 0   ;;  %v309_v3 = vld [vmem:[%s822_s2 + $0x28] sm:$0xff]  ;;  %vm272_vm1 = vcmask 517120   ;;  %v409_v63 = vlaneseq }
   0xf   : > { %530 = vmatprep.subr.mxu0 %v633_v1  ;;  %546 = vmatprep.mubr.msk.f32.mxu0 %vm634_vm0, %v633_v1  ;;  %v308_v4 = vld [vmem:[%s822_s2 + $0x20] sm:$0xff]  ;;  %v307_v8 = vld [vmem:[%s822_s2 + $0x18] sm:$0xff]  ;;  %v306_v13 = vld [vmem:[%s822_s2 + $0x10] sm:$0xff]  ;;  %vm312_vm2 = vcmask 523264   ;;  %s837_s19 = smov (!%p240_p5, %s619_s19), 1  ;;  %s839_s18 = smov (!%p242_p6, %s615_s18), 7 }
  0x10   : > { %531 = vmatpush3.msra.mxu0 %v311_v0  ;;  %v256_v5 = vld [vmem:[%s821_s1] sm:$0x3]  ;;  %v257_v6 = vld [vmem:[%s821_s1 + $0x2] sm:$0x3]  ;;  %v258_v7 = vld [vmem:[%s821_s1 + $0x4] sm:$0x3] }
  0x11   : > { %532 = vmatprep.subr.mxu0 %v633_v1  ;;  %v259_v9 = vld [vmem:[%s821_s1 + $0x6] sm:$0x3]  ;;  %v273_v10 = vsel %vm272_vm1, %v256_v5, 0.0  ;;  %v274_v11 = vsel %vm272_vm1, %v257_v6, 0.0  ;;  %v276_v12 = vsel %vm272_vm1, %v258_v7, 0.0  ;;  %v305_v17 = vld [vmem:[%s822_s2 + $0x8] sm:$0xff] }
  0x12   : > { %533 = vmatpush3.msra.mxu0 %v310_v2  ;;  %v260_v14 = vld [vmem:[%s821_s1 + $0x8] sm:$0x3]  ;;  %v275_v15 = vadd.f32 %v274_v11, %v273_v10  ;;  %v278_v16 = vsel %vm272_vm1, %v259_v9, 0.0  ;;  %v261_v18 = vld [vmem:[%s821_s1 + $0xa] sm:$0x3]  ;;  %v304_v21 = vld [vmem:[%s822_s2] sm:$0xff] }
  0x13   : > { %534 = vmatprep.subr.mxu0 %v633_v1  ;;  %v280_v20 = vsel %vm272_vm1, %v260_v14, 0.0  ;;  %v262_v22 = vld [vmem:[%s821_s1 + $0xc] sm:$0x3]  ;;  %v282_v24 = vsel %vm272_vm1, %v261_v18, 0.0  ;;  %v263_v25 = vld [vmem:[%s821_s1 + $0xe] sm:$0x3] }
  0x14   : > { %535 = vmatpush3.msra.mxu0 %v309_v3  ;;  %v277_v19 = vadd.f32 %v276_v12, %v275_v15  ;;  %v284_v27 = vsel %vm272_vm1, %v262_v22, 0.0  ;;  %v264_v28 = vld [vmem:[%s821_s1 + $0x10] sm:$0x3]  ;;  %v286_v30 = vsel %vm272_vm1, %v263_v25, 0.0  ;;  %v265_v31 = vld [vmem:[%s821_s1 + $0x12] sm:$0x3] }
  0x15   : > { %536 = vmatprep.subr.mxu0 %v633_v1  ;;  %v288_v33 = vsel %vm272_vm1, %v264_v28, 0.0  ;;  %v266_v34 = vld [vmem:[%s821_s1 + $0x14] sm:$0x3]  ;;  %v290_v36 = vsel %vm272_vm1, %v265_v31, 0.0  ;;  %v267_v37 = vld [vmem:[%s821_s1 + $0x16] sm:$0x3] }
  0x16   : > { %537 = vmatpush3.msra.mxu0 %v308_v4  ;;  %v279_v23 = vadd.f32 %v278_v16, %v277_v19  ;;  %v292_v39 = vsel %vm272_vm1, %v266_v34, 0.0  ;;  %v268_v40 = vld [vmem:[%s821_s1 + $0x18] sm:$0x3]  ;;  %v294_v42 = vsel %vm272_vm1, %v267_v37, 0.0  ;;  %v269_v43 = vld [vmem:[%s821_s1 + $0x1a] sm:$0x3] }
  0x17   : > { %538 = vmatprep.subr.mxu0 %v633_v1  ;;  %v296_v45 = vsel %vm272_vm1, %v268_v40, 0.0  ;;  %v270_v46 = vld [vmem:[%s821_s1 + $0x1c] sm:$0x3]  ;;  %v298_v48 = vsel %vm272_vm1, %v269_v43, 0.0  ;;  %v271_v49 = vld [vmem:[%s821_s1 + $0x1e] sm:$0x3] }
  0x18   : > { %539 = vmatpush3.msra.mxu0 %v307_v8  ;;  %v281_v26 = vadd.f32 %v280_v20, %v279_v23  ;;  %v300_v51 = vsel %vm272_vm1, %v270_v46, 0.0  ;;  %v302_v53 = vsel %vm272_vm1, %v271_v49, 0.0  ;;  %s513_s12 = sshll.u32 %s837_s19, 3  ;;  %v410_v0 = vshrl.u32 %v409_v63, 7  ;;  %v402_v6 = vld [vmem:[%s824_s4] sm:$0x1] }
  0x19   : > { %540 = vmatprep.subr.mxu0 %v633_v1  ;;  %s245_s13 = sadd.s32 %s513_s12, %s839_s18 }
  0x1a   : > { %541 = vmatpush3.msra.mxu0 %v306_v13  ;;  %v283_v29 = vadd.f32 %v282_v24, %v281_v26  ;;  %s514_s16 = sshll.u32 %s245_s13, 3  ;;  %v411_v4 = vsub.s32 1, %v410_v0  ;;  %v417_v9 = vsub.s32 0, %v410_v0 }
  0x1b   : > { %542 = vmatprep.subr.mxu0 %v633_v1  ;;  %s247_s26 = scalar_lea.vmem %s820_s0, %s514_s16  ;;  %s255_s29 = scalar_lea.vmem %s825_s5, %s514_s16 }
  0x1c   : > { %543 = vmatpush3.msra.mxu0 %v305_v17  ;;  %v285_v32 = vadd.f32 %v284_v27, %v283_v29  ;;  %v408_v10 = vld [vmem:[%s247_s26] sm:$0xff] }
  0x1d   : > { %544 = vmatprep.subr.mxu0 %v633_v1  ;;  %v518_v1 = vld [vmem:[%s823_s3] ss:$0 sm:$0xff] }
  0x1e   : > { %545 = vmatpush3.msra.mxu0 %v304_v21  ;;  %v287_v35 = vadd.f32 %v286_v30, %v285_v32 }
  0x20   : > { %v289_v38 = vadd.f32 %v288_v33, %v287_v35 }
  0x22   : > { %v291_v41 = vadd.f32 %v290_v36, %v289_v38 }
  0x24   : > { %v293_v44 = vadd.f32 %v292_v39, %v291_v41 }
  0x26   : > { %v295_v47 = vadd.f32 %v294_v42, %v293_v44 }
  0x28   : > { %v297_v50 = vadd.f32 %v296_v45, %v295_v47 }
  0x2a   : > { %v299_v52 = vadd.f32 %v298_v48, %v297_v50 }
  0x2c   : > { %v301_v54 = vadd.f32 %v300_v51, %v299_v52 }
  0x2e   : > { %v303_v55 = vadd.f32 %v302_v53, %v301_v54 }
  0x30   : > { %547 = vmatmul.mubr.msk.f32.vlgmr.msra.gmra.mxu0 %vm312_vm2, %v303_v55 }
  0xf0   : > { %v382_v56 = vpop.f32.mrf.mxu0 }
  0xf1   : > { %v386_v57 = vmul.f32 0.0009765625, %v382_v56 }
  0xf2   : > { %v548_v58 = vpop.f32.mrf.mxu0 }
  0xf3   : > { %v387_v59 = vmul.f32 %v386_v57, %v386_v57 }
  0xf5   : > { %v389_v60 = vrot.slane %v387_v59, 7 }
  0xf7   : > { %v391_v61 = vsub.f32 %v386_v57, %v389_v60 }
  0xf9   : > { %v392_v62 = vadd.f32 1e-05, %v391_v61 }
  0xfb   : > { %591 = vrsqrt.f32 %v392_v62 }
 0x108   : > { %v592_v2 = vpop.eup %591 }
 0x109   : > { %v401_v3 = vmul.f32 %v592_v2, %v518_v1 }
 0x10b   : > { %v404_v5 = vrot.slane %v401_v3, 1  ;;  %v412_v8 = vrot.slane %v401_v3, %v411_v4 }
 0x10d   : > { %v406_v7 = vmul.f32 %v404_v5, %v386_v57  ;;  %v413_v12 = vmul.f32 %v412_v8, %v408_v10 }
 0x10f   : > { %v407_v11 = vsub.f32 %v402_v6, %v406_v7 }
 0x111   : > { %v418_v13 = vrot.slane %v407_v11, %v417_v9 }
 0x113   : > { %v420_v14 = vadd.f32 %v418_v13, %v413_v12 }
 0x115   : > { %421 = vst.msk [vmem:[%s255_s29] sm:$0xff] %vm312_vm2, %v420_v14 }
 0x116 PF: > { %s15_s22 = sadd.s32 1, %s631_s22   ;;  %s826_s18 = smov %s623_s20 }
 0x117   : > { %p12_p7 = scmp.ge.s32.totalorder %s15_s22, 18   ;;  %s827_s19 = smov %s627_s21 }
 0x118   : > { %s828_s20 = smov %s831_s23  ;;  %s829_s21 = smov %s835_s24 }
 0x119   :  { %14 = sbr.rel (!%p12_p7) target bundleno = 3 (0x3), region = 70 }

// kernel: conv_component_3d.2
= control target key start
LH: loop header
LB: loop body
LE: loop exit
PB: predicated region body
PF: predicated region fallthrough
CT: control target
= control target key end

     0   :  { %s1717_s24 = smov 0   ;;  %s1719_s25 = smov 0   ;;  %s2038_s0 = inlined_call_operand.vmem [shape: f32[2,10,10,40], index: 0, kind: input, shape index: {}, may-alias: {0,1,2}]   ;;  %s2039_s1 = inlined_call_operand.vmem [shape: f32[2,10,10,40], index: 1, kind: input, shape index: {}, may-alias: {0,1,2}]   ;;  %s2040_s2 = inlined_call_operand.vmem [shape: f32[2,10,10,40], index: 2, kind: input, shape index: {}, may-alias: {0,1,2}]   ;;  %s2041_s3 = inlined_call_operand.vmem [shape: f32[3,3,40,64], index: 3, kind: input, shape index: {}]   ;;  %s2042_s4 = inlined_call_operand.vmem [shape: f32[1,64], index: 4, kind: input, shape index: {}]   ;;  %s2043_s5 = inlined_call_operand.vmem [shape: f32[1,64], index: 5, kind: input, shape index: {}]   ;;  %s2044_s6 = inlined_call_operand.vmem [shape: f32[2,8,8,64], index: 6, kind: output, shape index: {0}]   ;;  %s2045_s7 = inlined_call_operand.vmem [shape: f32[16,2,64], index: 7, kind: output, shape index: {1}]  }
   0x1   :  { %s1721_s26 = smov 0   ;;  %s1723_s27 = smov 0  }
   0x2   :  { %s1725_s28 = smov 0  }
   0x3 LB: > { %s27_s29 = sadd.s32 1, %s1665_s26  ;;  %s30_s30 = sadd.s32 1, %s1669_s27  ;;  %s1673_s28 = sphi %s1725_s28, %s18_s28   ;;  %s1669_s27 = sphi %s1723_s27, %s2050_s27   ;;  %s1665_s26 = sphi %s1721_s26, %s2049_s26   ;;  %s1661_s25 = sphi %s1719_s25, %s2048_s25   ;;  %s1657_s24 = sphi %s1717_s24, %s2047_s24  }
   0x4   : > { %p28_p0 = scmp.ge.s32.totalorder %s27_s29, 8  ;;  %p1357_p1 = scmp.ge.s32.totalorder %s1673_s28, 1 }
   0x5   : > { %p304_p2 = scmp.lt.s32.totalorder %s1673_s28, 17 }
   0x6   : > { %s2052_s29 = smov (%p28_p0, %s27_s29), 0  ;;  %s2054_s30 = smov (!%p28_p0, %s30_s30), %s1669_s27 }
   0x7   : > { %p305_p3 = pnand %p1357_p1, %p304_p2  ;;  %p32_p4 = scmp.ge.s32.totalorder %s2054_s30, 2 }
   0x8   : > { %p369_p5 = scmp.lt.s32.totalorder (!%p305_p3), %s1661_s25, 1  ;;  %p371_p6 = scmp.lt.s32.totalorder (!%p305_p3), %s1657_s24, 9 }
   0x9   : > { %s2056_s30 = smov (%p32_p4, %s2054_s30), 0  ;;  %308 = sbr.rel (%p305_p3) target bundleno = 289 (0x121), region = 44 }
   0xa   : > { %s378_s16 = sadd.s32 (!%p305_p3), 1, %s1657_s24  ;;  %s389_s8 = sadd.s32 (!%p305_p3), 2, %s1657_s24 }
   0xb   : > { %p1793_p7 = scmp.lt.s32.totalorder (!%p305_p3), %s378_s16, 9  ;;  %p392_p8 = scmp.lt.s32.totalorder (!%p305_p3), %s389_s8, 9 }
   0xc   : > { %p402_p9 = scmp.lt.s32.totalorder (!%p305_p3), %s1657_s24, 7 }
   0xe   : > { %v1372_v0 = vld [vmem:[%s2041_s3 + $0x48] sm:$0xff]  ;;  %v421_v1 = vld [vmem:[%s2041_s3 + $0x20] sm:$0xff]  ;;  %v1675_v2 = vmov 0.0   ;;  %v420_v4 = vld [vmem:[%s2041_s3 + $0x18] sm:$0xff]  ;;  %s1769_s17 = scalar_select %p369_p5, %s1661_s25, 1  ;;  %vm429_vm0 = vcmask 326656  }
   0xf   : > { %1475 = vmatprep.subr.mxu0 %v1675_v2  ;;  %1488 = vmatprep.subr.mxu1 %v1675_v2  ;;  %v1371_v3 = vld [vmem:[%s2041_s3 + $0x40] sm:$0xff]  ;;  %v1370_v5 = vld [vmem:[%s2041_s3 + $0x38] sm:$0xff]  ;;  %v419_v6 = vld [vmem:[%s2041_s3 + $0x10] sm:$0xff]  ;;  %s372_s22 = scalar_select %p371_p6, %s1657_s24, 9  ;;  %vm1676_vm1 = vmmov 0   ;;  %vm1161_vm3 = vcmask 523264  }
  0x10   : > { %1476 = vmatpush3.msra.mxu0 %v1372_v0  ;;  %1489 = vmatpush3.msra.mxu1 %v421_v1  ;;  %s1781_s23 = smul.u32 20, %s1769_s17  ;;  %v1369_v7 = vld [vmem:[%s2041_s3 + $0x30] sm:$0xff]  ;;  %v418_v8 = vld [vmem:[%s2041_s3 + $0x8] sm:$0xff]  ;;  %v417_v10 = vld [vmem:[%s2041_s3] sm:$0xff]  ;;  %s2058_s16 = smov (!%p1793_p7, %s378_s16), 9  ;;  %vm1178_vm4 = vcmask 1040384  }
  0x11   : > { %1477 = vmatprep.subr.mxu0 %v1675_v2  ;;  %1490 = vmatprep.subr.mxu1 %v1675_v2  ;;  %s1358_s12 = sshll.u32 %s372_s22, 1  ;;  %v1368_v9 = vld [vmem:[%s2041_s3 + $0x28] sm:$0xff]  ;;  %v1379_v13 = vld [vmem:[%s2041_s3 + $0x70] sm:$0xff]  ;;  %v1385_v15 = vld [vmem:[%s2041_s3 + $0x98] sm:$0xff]  ;;  %s2060_s8 = smov (!%p392_p8, %s389_s8), 9  ;;  %vm1180_vm5 = vcmask 517120  }
  0x12   : > { %1478 = vmatpush3.msra.mxu0 %v1371_v3  ;;  %1491 = vmatpush3.msra.mxu1 %v420_v4  ;;  %s375_s14 = sadd.s32 %s1781_s23, %s1358_s12  ;;  %s1360_s12 = sshll.u32 %s2058_s16, 1  ;;  %v1378_v14 = vld [vmem:[%s2041_s3 + $0x68] sm:$0xff]  ;;  %v1377_v16 = vld [vmem:[%s2041_s3 + $0x60] sm:$0xff]  ;;  %v1384_v17 = vld [vmem:[%s2041_s3 + $0x90] sm:$0xff] }
  0x13   : > { %1479 = vmatprep.subr.mxu0 %v1675_v2  ;;  %1492 = vmatprep.subr.mxu1 %v1675_v2  ;;  %s1359_s19 = sshll.u32 %s375_s14, 3  ;;  %v1376_v18 = vld [vmem:[%s2041_s3 + $0x58] sm:$0xff]  ;;  %v1383_v19 = vld [vmem:[%s2041_s3 + $0x88] sm:$0xff]  ;;  %v1375_v20 = vld [vmem:[%s2041_s3 + $0x50] sm:$0xff]  ;;  %s1362_s18 = sshll.u32 %s2060_s8, 1 }
  0x14   : > { %1480 = vmatpush3.msra.mxu0 %v1370_v5  ;;  %1493 = vmatpush3.msra.mxu1 %v419_v6  ;;  %s1806_s22 = scalar_lea.vmem %s2038_s0, %s1359_s19  ;;  %s385_s19 = sadd.s32 %s1781_s23, %s1360_s12  ;;  %v1382_v21 = vld [vmem:[%s2041_s3 + $0x80] sm:$0xff]  ;;  %v1381_v23 = vld [vmem:[%s2041_s3 + $0x78] sm:$0xff]  ;;  %v1397_v27 = vld [vmem:[%s2041_s3 + $0xe8] sm:$0xff] }
  0x15   : > { %1481 = vmatprep.subr.mxu0 %v1675_v2  ;;  %1494 = vmatprep.subr.mxu1 %v1675_v2  ;;  %v422_v11 = vld [vmem:[%s1806_s22 + $0x1] sm:$0xff]  ;;  %s1361_s14 = sshll.u32 %s385_s19, 3  ;;  %v1390_v26 = vld [vmem:[%s2041_s3 + $0xb8] sm:$0xff]  ;;  %v1389_v28 = vld [vmem:[%s2041_s3 + $0xb0] sm:$0xff]  ;;  %s396_s8 = sadd.s32 %s1781_s23, %s1362_s18 }
  0x16   : > { %1482 = vmatpush3.msra.mxu0 %v1369_v7  ;;  %1495 = vmatpush3.msra.mxu1 %v418_v8  ;;  %v416_v12 = vld [vmem:[%s1806_s22] sm:$0xff]  ;;  %s1864_s19 = scalar_lea.vmem %s2039_s1, %s1361_s14  ;;  %v1388_v30 = vld [vmem:[%s2041_s3 + $0xa8] sm:$0xff]  ;;  %v1395_v31 = vld [vmem:[%s2041_s3 + $0xd8] sm:$0xff]  ;;  %s1363_s23 = sshll.u32 %s396_s8, 3 }
  0x17   : > { %1483 = vmatprep.subr.mxu0 %v1675_v2  ;;  %1485 = vmatprep.mubr.msk.f32.mxu0 %vm1676_vm1, %v1675_v2  ;;  %v576_v22 = vld [vmem:[%s1806_s22 + $0x2] sm:$0xff]  ;;  %v1394_v33 = vld [vmem:[%s2041_s3 + $0xd0] sm:$0xff]  ;;  %v1409_v39 = vld [vmem:[%s2041_s3 + $0x138] sm:$0xff]  ;;  %s1958_s10 = scalar_lea.vmem %s2040_s2, %s1363_s23  ;;  %s1364_s12 = sshll.u32 %s1769_s17, 3 }
  0x18   : > { %1484 = vmatpush3.msra.mxu0 %v1368_v9  ;;  %1496 = vmatprep.subr.mxu1 %v1675_v2  ;;  %v1391_v24 = vld [vmem:[%s2041_s3 + $0xc0] sm:$0xff]  ;;  %v1393_v35 = vld [vmem:[%s2041_s3 + $0xc8] sm:$0xff]  ;;  %v1403_v36 = vld [vmem:[%s2041_s3 + $0x110] sm:$0xff]  ;;  %s1366_s16 = sshll.u32 %s1661_s25, 3 }
  0x19   : > { %1486 = vmatmul.mubr.msk.f32.vlgmr.msra.gmra.mxu0 %vm429_vm0, %v422_v11  ;;  %1497 = vmatpush3.msra.mxu1 %v417_v10  ;;  %v657_v25 = vld [vmem:[%s1864_s19] sm:$0xff]  ;;  %v1402_v38 = vld [vmem:[%s2041_s3 + $0x108] sm:$0xff]  ;;  %v1408_v41 = vld [vmem:[%s2041_s3 + $0x130] sm:$0xff]  ;;  %s409_s9 = sadd.s32 %s1657_s24, %s1366_s16 }
  0x1a   : > { %1498 = vmatprep.mubr.msk.f32.mxu1 %vm1676_vm1, %v1675_v2  ;;  %1501 = vmatprep.subr.mxu0 %v1675_v2  ;;  %v1396_v29 = vld [vmem:[%s2041_s3 + $0xe0] sm:$0xff]  ;;  %v1400_v42 = vld [vmem:[%s2041_s3 + $0xf8] sm:$0xff]  ;;  %v1407_v43 = vld [vmem:[%s2041_s3 + $0x128] sm:$0xff]  ;;  %p410_p10 = scmp.lt.s32.totalorder %s409_s9, 15 }
  0x1b   : > { %1499 = vmatmul.mubr.msk.f32.vlgmr.msra.gmra.mxu1 %vm429_vm0, %v416_v12  ;;  %1502 = vmatpush3.msra.mxu0 %v1379_v13  ;;  %v1387_v32 = vld [vmem:[%s2041_s3 + $0xa0] sm:$0xff]  ;;  %v1399_v44 = vld [vmem:[%s2041_s3 + $0xf0] sm:$0xff]  ;;  %v1405_v47 = vld [vmem:[%s2041_s3 + $0x118] sm:$0xff] }
  0x1c   : > { %1503 = vmatprep.subr.mxu0 %v1675_v2  ;;  %1514 = vmatprep.subr.mxu1 %v1675_v2  ;;  %v738_v34 = vld [vmem:[%s1864_s19 + $0x1] sm:$0xff]  ;;  %v1414_v50 = vld [vmem:[%s2041_s3 + $0x158] sm:$0xff]  ;;  %v1413_v51 = vld [vmem:[%s2041_s3 + $0x150] sm:$0xff]  ;;  %s2062_s9 = smov (!%p410_p10, %s409_s9), 15 }
  0x1d   : > { %1504 = vmatpush3.msra.mxu0 %v1378_v14  ;;  %1515 = vmatpush3.msra.mxu1 %v1385_v15  ;;  %v819_v37 = vld [vmem:[%s1864_s19 + $0x2] sm:$0xff]  ;;  %v1417_v15 = vld [vmem:[%s2042_s4] ss:$0 sm:$0xff]  ;;  %s1367_s25 = sshll.u32 %s2062_s9, 1 }
  0x1e   : > { %1505 = vmatprep.subr.mxu0 %v1675_v2  ;;  %1516 = vmatprep.subr.mxu1 %v1675_v2  ;;  %v1401_v40 = vld [vmem:[%s2041_s3 + $0x100] sm:$0xff]  ;;  %v1412_v52 = vld [vmem:[%s2041_s3 + $0x148] sm:$0xff]  ;;  %s413_s22 = scalar_lea.vmem %s2045_s7, %s1367_s25 }
  0x1f   : > { %1506 = vmatpush3.msra.mxu0 %v1377_v16  ;;  %1517 = vmatpush3.msra.mxu1 %v1384_v17  ;;  %v1406_v45 = vld [vmem:[%s2041_s3 + $0x120] sm:$0xff] }
  0x20   : > { %1507 = vmatprep.subr.mxu0 %v1675_v2  ;;  %1518 = vmatprep.subr.mxu1 %v1675_v2  ;;  %v900_v46 = vld [vmem:[%s1958_s10] sm:$0xff] }
  0x21   : > { %1508 = vmatpush3.msra.mxu0 %v1376_v18  ;;  %1519 = vmatpush3.msra.mxu1 %v1383_v19  ;;  %v1415_v48 = vld [vmem:[%s2041_s3 + $0x160] sm:$0xff] }
  0x22   : > { %1509 = vmatprep.subr.mxu0 %v1675_v2  ;;  %1520 = vmatprep.subr.mxu1 %v1675_v2  ;;  %v981_v49 = vld [vmem:[%s1958_s10 + $0x1] sm:$0xff]  ;;  %v1418_v17 = vld [vmem:[%s2043_s5] ss:$0 sm:$0xff] }
  0x23   : > { %1510 = vmatpush3.msra.mxu0 %v1375_v20  ;;  %1511 = vmatprep.mubr.msk.f32.mxu0 %vm1676_vm1, %v1675_v2  ;;  %v1411_v53 = vld [vmem:[%s2041_s3 + $0x140] sm:$0xff] }
  0x24   : > { %1521 = vmatpush3.msra.mxu1 %v1382_v21  ;;  %1512 = vmatmul.mubr.msk.f32.vlgmr.msra.gmra.mxu0 %vm429_vm0, %v576_v22  ;;  %v1062_v54 = vld [vmem:[%s1958_s10 + $0x2] sm:$0xff]  ;;  %s403_s10 = scalar_select %p402_p9, %s1657_s24, 7 }
  0x25   : > { %1522 = vmatprep.subr.mxu1 %v1675_v2  ;;  %1527 = vmatprep.subr.mxu0 %v1675_v2 }
  0x26   : > { %1523 = vmatpush3.msra.mxu1 %v1381_v23  ;;  %1524 = vmatprep.mubr.msk.f32.mxu1 %vm1676_vm1, %v1675_v2  ;;  %s405_s19 = sadd.s32 %s1364_s12, %s403_s10 }
  0x27   : > { %1528 = vmatpush3.msra.mxu0 %v1391_v24  ;;  %1525 = vmatmul.mubr.msk.f32.vlgmr.msra.gmra.mxu1 %vm429_vm0, %v657_v25  ;;  %s1365_s13 = sshll.u32 %s405_s19, 3 }
  0x28   : > { %1529 = vmatprep.subr.mxu0 %v1675_v2  ;;  %1540 = vmatprep.subr.mxu1 %v1675_v2  ;;  %s407_s17 = scalar_lea.vmem %s2044_s6, %s1365_s13 }
  0x29   : > { %1530 = vmatpush3.msra.mxu0 %v1390_v26  ;;  %1541 = vmatpush3.msra.mxu1 %v1397_v27 }
  0x2a   : > { %1531 = vmatprep.subr.mxu0 %v1675_v2  ;;  %1542 = vmatprep.subr.mxu1 %v1675_v2 }
  0x2b   : > { %1532 = vmatpush3.msra.mxu0 %v1389_v28  ;;  %1543 = vmatpush3.msra.mxu1 %v1396_v29 }
  0x2c   : > { %1533 = vmatprep.subr.mxu0 %v1675_v2  ;;  %1544 = vmatprep.subr.mxu1 %v1675_v2 }
  0x2d   : > { %1534 = vmatpush3.msra.mxu0 %v1388_v30  ;;  %1545 = vmatpush3.msra.mxu1 %v1395_v31 }
  0x2e   : > { %1535 = vmatprep.subr.mxu0 %v1675_v2  ;;  %1546 = vmatprep.subr.mxu1 %v1675_v2 }
  0x2f   : > { %1536 = vmatpush3.msra.mxu0 %v1387_v32  ;;  %1537 = vmatprep.mubr.msk.f32.mxu0 %vm1676_vm1, %v1675_v2 }
  0x30   : > { %1547 = vmatpush3.msra.mxu1 %v1394_v33  ;;  %1538 = vmatmul.mubr.msk.f32.vlgmr.msra.gmra.mxu0 %vm429_vm0, %v738_v34 }
  0x31   : > { %1548 = vmatprep.subr.mxu1 %v1675_v2  ;;  %1553 = vmatprep.subr.mxu0 %v1675_v2 }
  0x32   : > { %1549 = vmatpush3.msra.mxu1 %v1393_v35  ;;  %1550 = vmatprep.mubr.msk.f32.mxu1 %vm1676_vm1, %v1675_v2 }
  0x33   : > { %1554 = vmatpush3.msra.mxu0 %v1403_v36  ;;  %1551 = vmatmul.mubr.msk.f32.vlgmr.msra.gmra.mxu1 %vm429_vm0, %v819_v37 }
  0x34   : > { %1555 = vmatprep.subr.mxu0 %v1675_v2  ;;  %1566 = vmatprep.subr.mxu1 %v1675_v2 }
  0x35   : > { %1556 = vmatpush3.msra.mxu0 %v1402_v38  ;;  %1567 = vmatpush3.msra.mxu1 %v1409_v39 }
  0x36   : > { %1557 = vmatprep.subr.mxu0 %v1675_v2  ;;  %1568 = vmatprep.subr.mxu1 %v1675_v2 }
  0x37   : > { %1558 = vmatpush3.msra.mxu0 %v1401_v40  ;;  %1569 = vmatpush3.msra.mxu1 %v1408_v41 }
  0x38   : > { %1559 = vmatprep.subr.mxu0 %v1675_v2  ;;  %1570 = vmatprep.subr.mxu1 %v1675_v2 }
  0x39   : > { %1560 = vmatpush3.msra.mxu0 %v1400_v42  ;;  %1571 = vmatpush3.msra.mxu1 %v1407_v43 }
  0x3a   : > { %1561 = vmatprep.subr.mxu0 %v1675_v2  ;;  %1572 = vmatprep.subr.mxu1 %v1675_v2 }
  0x3b   : > { %1562 = vmatpush3.msra.mxu0 %v1399_v44  ;;  %1563 = vmatprep.mubr.msk.f32.mxu0 %vm1676_vm1, %v1675_v2 }
  0x3c   : > { %1573 = vmatpush3.msra.mxu1 %v1406_v45  ;;  %1564 = vmatmul.mubr.msk.f32.vlgmr.msra.gmra.mxu0 %vm429_vm0, %v900_v46 }
  0x3d   : > { %1574 = vmatprep.subr.mxu1 %v1675_v2  ;;  %1579 = vmatprep.subr.mxu0 %v1675_v2 }
  0x3e   : > { %1575 = vmatpush3.msra.mxu1 %v1405_v47  ;;  %1576 = vmatprep.mubr.msk.f32.mxu1 %vm1676_vm1, %v1675_v2 }
  0x3f   : > { %1580 = vmatpush3.msra.mxu0 %v1415_v48  ;;  %1577 = vmatmul.mubr.msk.f32.vlgmr.msra.gmra.mxu1 %vm429_vm0, %v981_v49 }
  0x40   : > { %1581 = vmatprep.subr.mxu0 %v1675_v2  ;;  %1589 = vmatprep.mubr.msk.f32.mxu0 %vm1676_vm1, %v1675_v2 }
  0x41   : > { %1582 = vmatpush3.msra.mxu0 %v1414_v50 }
  0x42   : > { %1583 = vmatprep.subr.mxu0 %v1675_v2 }
  0x43   : > { %1584 = vmatpush3.msra.mxu0 %v1413_v51 }
  0x44   : > { %1585 = vmatprep.subr.mxu0 %v1675_v2 }
  0x45   : > { %1586 = vmatpush3.msra.mxu0 %v1412_v52 }
  0x46   : > { %1587 = vmatprep.subr.mxu0 %v1675_v2 }
  0x47   : > { %1588 = vmatpush3.msra.mxu0 %v1411_v53 }
  0x48   : > { %1590 = vmatmul.mubr.msk.f32.vlgmr.msra.gmra.mxu0 %vm429_vm0, %v1062_v54 }
  0xd9   : > { %v499_v55 = vpop.f32.mrf.mxu0 }
  0xdb   : > { %v572_v56 = vpop.f32.mrf.mxu1  ;;  %v1487_v57 = vpop.f32.mrf.mxu0 }
  0xdc   : > { %v573_v3 = vadd.f32 %v572_v56, %v499_v55 }
  0xdd   : > { %v1500_v58 = vpop.f32.mrf.mxu1 }
  0xe4   : > { %v652_v59 = vpop.f32.mrf.mxu0 }
  0xe5   : > { %v656_v2 = vadd.f32 %v652_v59, %v573_v3 }
  0xe6   : > { %v1513_v60 = vpop.f32.mrf.mxu0 }
  0xe7   : > { %v733_v61 = vpop.f32.mrf.mxu1 }
  0xe8   : > { %v737_v5 = vadd.f32 %v733_v61, %v656_v2 }
  0xe9   : > { %v1526_v62 = vpop.f32.mrf.mxu1 }
  0xf0   : > { %v814_v63 = vpop.f32.mrf.mxu0 }
  0xf1   : > { %v818_v7 = vadd.f32 %v814_v63, %v737_v5 }
  0xf2   : > { %v1539_v0 = vpop.f32.mrf.mxu0 }
  0xf3   : > { %v895_v1 = vpop.f32.mrf.mxu1 }
  0xf4   : > { %v899_v10 = vadd.f32 %v895_v1, %v818_v7 }
  0xf5   : > { %v1552_v4 = vpop.f32.mrf.mxu1 }
  0xfc   : > { %v976_v6 = vpop.f32.mrf.mxu0 }
  0xfd   : > { %v980_v12 = vadd.f32 %v976_v6, %v899_v10 }
  0xfe   : > { %v1565_v8 = vpop.f32.mrf.mxu0 }
  0xff   : > { %v1057_v9 = vpop.f32.mrf.mxu1 }
 0x100   : > { %v1061_v13 = vadd.f32 %v1057_v9, %v980_v12 }
 0x101   : > { %v1578_v11 = vpop.f32.mrf.mxu1 }
 0x108   : > { %v1138_v14 = vpop.f32.mrf.mxu0 }
 0x109   : > { %v1142_v16 = vadd.f32 %v1138_v14, %v1061_v13 }
 0x10a   : > { %v1591_v18 = vpop.f32.mrf.mxu0 }
 0x10b   : > { %v1150_v19 = vadd.f32 %v1417_v15, %v1142_v16 }
 0x10d   : > { %vm1151_vm2 = vcmp.ge.f32.partialorder %v1150_v19, 0.0  ;;  %v1159_v20 = vmul.f32 %v1418_v17, %v1150_v19 }
 0x10f   : > { %v1160_v21 = vsel %vm1151_vm2, %v1150_v19, %v1159_v20 }
 0x110   : > { %1162 = vst.msk [vmem:[%s407_s17] sm:$0xff] %vm1161_vm3, %v1160_v21  ;;  %v1163_v22 = vsel %vm1161_vm3, %v1160_v21, 0.0  ;;  %v1170_v23 = vmul.f32 %v1160_v21, %v1160_v21 }
 0x111   : > { %v1164_v24 = vrot.slane %v1163_v22, 4 }
 0x112   : > { %v1171_v25 = vsel %vm1161_vm3, %v1170_v23, 0.0 }
 0x113   : > { %v1165_v26 = vadd.f32 %v1164_v24, %v1163_v22  ;;  %v1172_v27 = vrot.slane %v1171_v25, 4 }
 0x115   : > { %v1166_v28 = vrot.slane %v1165_v26, 2  ;;  %v1173_v29 = vadd.f32 %v1172_v27, %v1171_v25 }
 0x117   : > { %v1167_v30 = vadd.f32 %v1166_v28, %v1165_v26  ;;  %v1174_v31 = vrot.slane %v1173_v29, 2 }
 0x119   : > { %v1168_v32 = vrot.slane %v1167_v30, 1  ;;  %v1175_v33 = vadd.f32 %v1174_v31, %v1173_v29 }
 0x11b   : > { %v1176_v34 = vrot.slane %v1175_v33, 1  ;;  %v1169_v35 = vadd.f32 %v1168_v32, %v1167_v30 }
 0x11d   : > { %v1177_v36 = vadd.f32 %v1176_v34, %v1175_v33 }
 0x11f   : > { %v1179_v37 = vsel %vm1178_vm4, %v1169_v35, %v1177_v36 }
 0x120   : > { %1181 = vst.msk [vmem:[%s413_s22] sm:$0x3] %vm1180_vm5, %v1179_v37 }
 0x121 PF: > { %s18_s28 = sadd.s32 1, %s1673_s28   ;;  %s2047_s24 = smov %s1665_s26 }
 0x122   : > { %p15_p11 = scmp.ge.s32.totalorder %s18_s28, 18   ;;  %s2048_s25 = smov %s1669_s27 }
 0x123   : > { %s2049_s26 = smov %s2052_s29  ;;  %s2050_s27 = smov %s2056_s30 }
 0x124   :  { %17 = sbr.rel (!%p15_p11) target bundleno = 3 (0x3), region = 100 }

</bundles_post_ra>
